<compile_context>
chip_gen: v7x
topology: tpu7x:2x2x1
jax: 0.10.0
libtpu: 0.0.40
codegen_flags: <defaults>
</compile_context>

<pallas_src>
import jax
import jax.numpy as jnp
from jax.experimental import pallas as pl
from jax.experimental.pallas import tpu as pltpu

HI = jax.lax.Precision.HIGHEST  # reference only


def make_word_choser_kernel(sen_len, hidden_dim, nlayers):
  H = hidden_dim
  f32 = jnp.float32
  bf16 = jnp.bfloat16

  def kernel(*refs):
    (sen_ref, tree_ref, hid_ref, hidT_ref, w_sen0_ref, dtop_ref, dbot_ref,
     mask_ref, w_tree0_ref, w_hh0_ref, b0_ref) = refs[:11]
    upper = refs[11:11 + 2 * (nlayers - 1)]   # per upper layer: w_cat, bias
    out_ref = refs[-1]                        # (sen_len, ntok_pad)

    # ---- layer-0 input-gate contributions: all timesteps in one MXU matmul.
    # The sentence embedding is row-constant -> fold it into the bias once
    # (no broadcast / lane concat of the input).
    bias0 = b0_ref[...] + jnp.dot(sen_ref[...], w_sen0_ref[...],
                                  preferred_element_type=f32)        # (1, 4H)
    gates0 = jnp.dot(tree_ref[...], w_tree0_ref[...],
                     preferred_element_type=f32) + bias0             # (S, 4H)

    # Hoist recurrent / upper-layer weights into vregs once (bf16 -> half the vregs).
    w_hh0 = w_hh0_ref[...]                                           # (H, 4H)
    w_cat = [upper[2 * i][...] for i in range(nlayers - 1)]          # (2H, 4H)
    b_up = [upper[2 * i + 1][...] for i in range(nlayers - 1)]       # (1, 4H)

    def nonlin(g, c_prev):
      # g-gate (3rd quarter) columns were pre-scaled by 2 in the wrapper, so
      # tanh(x) = 2*sigmoid(2x) - 1 costs only the one full-width sigmoid.
      sig = jax.nn.sigmoid(g)                 # one (1, 4H) EUP pass (i, f, g, o)
      i_g = sig[:, 0 * H:1 * H]
      f_g = sig[:, 1 * H:2 * H]
      g_g = 2.0 * sig[:, 2 * H:3 * H] - 1.0
      o_g = sig[:, 3 * H:4 * H]
      c = f_g * c_prev + i_g * g_g
      h = o_g * jnp.tanh(c)
      return h, c

    zero = jnp.zeros((1, H), f32)
    h_st = [zero] * nlayers
    c_st = [zero] * nlayers
    h_out = []
    # Fully unrolled (t, layer) wavefront: layer l at step t only depends on
    # layer l-1 at step t and layer l at step t-1.  All state stays in vregs.
    # TODO(synk): for sen_len >~ 64 switch to lax.fori_loop with VMEM-carried
    # h/c state to avoid vreg spills from the full unroll.
    for t in range(sen_len):
      g0 = gates0[t:t + 1, :] + jnp.dot(h_st[0].astype(bf16), w_hh0,
                                        preferred_element_type=f32)
      h_st[0], c_st[0] = nonlin(g0, c_st[0])
      for l in range(1, nlayers):
        # One fused (1, 2H) @ (2H, 4H) MXU push per upper-layer cell
        # instead of separate input + recurrent dots.
        x_cat = jnp.concatenate([h_st[l - 1], h_st[l]], axis=1).astype(bf16)
        g = b_up[l - 1] + jnp.dot(x_cat, w_cat[l - 1],
                                  preferred_element_type=f32)
        h_st[l], c_st[l] = nonlin(g, c_st[l])
      h_out.append(h_st[nlayers - 1])

    output = jnp.concatenate(h_out, axis=0)            # (S, H) f32, in vregs
    output_bf = output.astype(bf16)

    # ---- attention = softmax(output @ hiddens^T) @ hiddens
    logits = jnp.dot(output_bf, hidT_ref[...],
                     preferred_element_type=f32)                     # (S, L)
    m = jnp.max(logits, axis=1, keepdims=True)
    e = jnp.exp(logits - m)
    attn = e * pl.reciprocal(jnp.sum(e, axis=1, keepdims=True), approx=True)
    ctx = jnp.dot(attn.astype(bf16), hid_ref[...],
                  preferred_element_type=f32)                        # (S, H)

    # ---- head: dim_out split into top/bottom halves -> no lane concat of
    # [output, ctx].  Padded columns carry a -1e30 additive mask so the softmax
    # over the lane-dense (S, ntok_pad) block equals the unpadded softmax.
    scores = (jnp.dot(output_bf, dtop_ref[...], preferred_element_type=f32)
              + jnp.dot(ctx.astype(bf16), dbot_ref[...],
                        preferred_element_type=f32)
              + mask_ref[...])                                       # (S, P)
    sm = jnp.max(scores, axis=1, keepdims=True)
    se = jnp.exp(scores - sm)
    # Exact denominator for the externally visible probabilities (tail op).
    out_ref[...] = se / jnp.sum(se, axis=1, keepdims=True)

  return kernel


def word_choser_forward(sen_emb, tree_embs, hiddens, dim_out, lstm_weights):
  """sen_emb (emb_dim,), tree_embs (sen_len, node_dim), hiddens (L, H),
  dim_out (2H, ntoken_out), lstm_weights: [(w_ih, w_hh, b_ih, b_hh)] per layer
  in PyTorch nn.LSTM shapes (gate order i, f, g, o)."""
  sen_len, node_dim = tree_embs.shape
  emb_dim = sen_emb.shape[0]
  H = lstm_weights[0][1].shape[1]
  nlayers = len(lstm_weights)
  ntoken_out = dim_out.shape[1]
  ntok_pad = ((ntoken_out + 127) // 128) * 128   # lane-dense output

  f32 = jnp.float32
  bf16 = jnp.bfloat16

  def gscale(w):
    # Scale the g-gate (3rd quarter) columns by 2 (last axis is 4H); exact
    # power-of-2 scale, so no extra rounding.  Enables tanh(x)=2*sigmoid(2x)-1.
    return w.at[..., 2 * H:3 * H].multiply(2.0)

  sen2d = jnp.asarray(sen_emb, f32).reshape(1, emb_dim).astype(bf16)
  tree = jnp.asarray(tree_embs, f32).astype(bf16)
  hid = jnp.asarray(hiddens, f32).astype(bf16)        # (L, H) for attn @ hiddens
  hidT = jnp.asarray(hiddens, f32).T.astype(bf16)     # (H, L) for output @ hiddens^T

  d = jnp.asarray(dim_out, f32)
  dtop = jnp.zeros((H, ntok_pad), f32).at[:, :ntoken_out].set(d[:H, :]).astype(bf16)
  dbot = jnp.zeros((H, ntok_pad), f32).at[:, :ntoken_out].set(d[H:, :]).astype(bf16)
  out_mask = jnp.full((1, ntok_pad), -1e30, f32).at[:, :ntoken_out].set(0.0)

  # Layer-0 input weight split into the sentence-embedding and tree-embedding
  # halves (the_inp = cat(sen_emb, tree_embs) along features); g-gate pre-scaled.
  w_ih0 = jnp.asarray(lstm_weights[0][0], f32)           # (4H, emb+node)
  w_sen0 = gscale(w_ih0[:, :emb_dim].T).astype(bf16)     # (emb_dim, 4H)
  w_tree0 = gscale(w_ih0[:, emb_dim:].T).astype(bf16)    # (node_dim, 4H)
  w_hh0 = gscale(jnp.asarray(lstm_weights[0][1], f32).T).astype(bf16)  # (H, 4H)
  b0 = gscale((jnp.asarray(lstm_weights[0][2], f32)
               + jnp.asarray(lstm_weights[0][3], f32)).reshape(1, 4 * H))

  layer_args = [w_tree0, w_hh0, b0]
  for l in range(1, nlayers):
    w_ih, w_hh, b_ih, b_hh = (jnp.asarray(a, f32) for a in lstm_weights[l])
    # Fused [W_in ; W_hh] so each upper-layer cell is one MXU push on
    # concat([h_{l-1,t}, h_{l,t-1}]).
    w_cat = gscale(jnp.concatenate([w_ih.T, w_hh.T], axis=0)).astype(bf16)  # (2H,4H)
    b = gscale((b_ih + b_hh).reshape(1, 4 * H))
    layer_args += [w_cat, b]

  kernel = make_word_choser_kernel(sen_len, H, nlayers)
  n_in = 8 + len(layer_args)
  out_pad = pl.pallas_call(
      kernel,
      out_shape=jax.ShapeDtypeStruct((sen_len, ntok_pad), f32),
      in_specs=[pl.BlockSpec(memory_space=pltpu.MemorySpace.VMEM)] * n_in,
      out_specs=pl.BlockSpec(memory_space=pltpu.MemorySpace.VMEM),
  )(sen2d, tree, hid, hidT, w_sen0, dtop, dbot, out_mask, *layer_args)
  return out_pad[:, :ntoken_out]


def word_choser_ref(sen_emb, tree_embs, hiddens, dim_out, lstm_weights):
  """Pure-JAX f32/HIGHEST reference mirroring the PyTorch forward (ht is False)."""
  sen_len = tree_embs.shape[0]
  x = jnp.concatenate(
      [jnp.tile(sen_emb[None, :], (sen_len, 1)), tree_embs], axis=1)
  for (w_ih, w_hh, b_ih, b_hh) in lstm_weights:
    H = w_hh.shape[1]
    h = jnp.zeros((H,), jnp.float32)
    c = jnp.zeros((H,), jnp.float32)
    outs = []
    for t in range(sen_len):
      g = (jnp.dot(w_ih, x[t], precision=HI) + b_ih
           + jnp.dot(w_hh, h, precision=HI) + b_hh)
      i = jax.nn.sigmoid(g[0:H])
      f = jax.nn.sigmoid(g[H:2 * H])
      gg = jnp.tanh(g[2 * H:3 * H])
      o = jax.nn.sigmoid(g[3 * H:4 * H])
      c = f * c + i * gg
      h = o * jnp.tanh(c)
      outs.append(h)
    x = jnp.stack(outs)
  out = x
  attn = jax.nn.softmax(jnp.dot(out, hiddens.T, precision=HI), axis=1)
  attn = jnp.dot(attn, hiddens, precision=HI)
  feat = jnp.concatenate([out, attn], axis=1)
  return jax.nn.softmax(jnp.dot(feat, dim_out, precision=HI), axis=1)


if __name__ == "__main__":
  # Small, module-consistent sizes.
  ntoken_out = 64
  hidden_dim = 32
  emb_dim = 16
  node_dim = 16
  nlayers = 2
  sen_len = 8      # tree_embs.size(0)
  n_hiddens = 8    # rows of the `hiddens` attention memory

  inpdim = emb_dim + node_dim
  outdim = 2 * hidden_dim

  key = jax.random.PRNGKey(0)
  keys = jax.random.split(key, 5 + 4 * nlayers)

  sen_emb = jax.random.normal(keys[0], (emb_dim,), jnp.float32)
  tree_embs = jax.random.normal(keys[1], (sen_len, node_dim), jnp.float32)
  hiddens = jax.random.normal(keys[2], (n_hiddens, hidden_dim), jnp.float32)
  # dim_out ~ U(-0.1, 0.1) as in init_weights()
  dim_out = jax.random.uniform(keys[3], (outdim, ntoken_out), jnp.float32,
                               minval=-0.1, maxval=0.1)

  # nn.LSTM default init: U(-1/sqrt(H), 1/sqrt(H)), gate order (i, f, g, o).
  k = 1.0 / (hidden_dim ** 0.5)
  lstm_weights = []
  for l in range(nlayers):
    in_dim_l = inpdim if l == 0 else hidden_dim
    kw = keys[4 + 4 * l: 8 + 4 * l]
    w_ih = jax.random.uniform(kw[0], (4 * hidden_dim, in_dim_l), jnp.float32,
                              minval=-k, maxval=k)
    w_hh = jax.random.uniform(kw[1], (4 * hidden_dim, hidden_dim), jnp.float32,
                              minval=-k, maxval=k)
    b_ih = jax.random.uniform(kw[2], (4 * hidden_dim,), jnp.float32,
                              minval=-k, maxval=k)
    b_hh = jax.random.uniform(kw[3], (4 * hidden_dim,), jnp.float32,
                              minval=-k, maxval=k)
    lstm_weights.append((w_ih, w_hh, b_ih, b_hh))

  out = word_choser_forward(sen_emb, tree_embs, hiddens, dim_out, lstm_weights)
  out = jax.block_until_ready(out)

  ref = jax.block_until_ready(
      word_choser_ref(sen_emb, tree_embs, hiddens, dim_out, lstm_weights))

  assert out.shape == (sen_len, ntoken_out)
  # Rows are softmax distributions (exact divide in the output softmax).
  assert jnp.allclose(jnp.sum(out, axis=1), 1.0, atol=1e-3)
  # Kernel feeds bf16 to the MXU (f32 accumulate) vs the f32/HIGHEST reference.
  assert jnp.allclose(out, ref, rtol=2e-2, atol=3e-3), (
      f"max abs diff {float(jnp.max(jnp.abs(out - ref)))}")

  print("KERNEL_OK")
</pallas_src>

<mosaic_0001>
module attributes {stable_mosaic.version = 11 : i64} {
  func.func @kernel(%arg0: memref<1x16xbf16, #tpu.memory_space<vmem>>, %arg1: memref<8x16xbf16, #tpu.memory_space<vmem>>, %arg2: memref<8x32xbf16, #tpu.memory_space<vmem>>, %arg3: memref<32x8xbf16, #tpu.memory_space<vmem>>, %arg4: memref<16x128xbf16, #tpu.memory_space<vmem>>, %arg5: memref<32x128xbf16, #tpu.memory_space<vmem>>, %arg6: memref<32x128xbf16, #tpu.memory_space<vmem>>, %arg7: memref<1x128xf32, #tpu.memory_space<vmem>>, %arg8: memref<16x128xbf16, #tpu.memory_space<vmem>>, %arg9: memref<32x128xbf16, #tpu.memory_space<vmem>>, %arg10: memref<1x128xf32, #tpu.memory_space<vmem>>, %arg11: memref<64x128xbf16, #tpu.memory_space<vmem>>, %arg12: memref<1x128xf32, #tpu.memory_space<vmem>>, %arg13: memref<8x128xf32, #tpu.memory_space<vmem>>) attributes {dimension_semantics = [], scalar_prefetch = 0 : i64, scratch_operands = 0 : i64, tpu.core_type = #tpu.core_type<tc>} {
    %c0 = arith.constant 0 : index
    %c0_0 = arith.constant 0 : index
    %0 = vector.load %arg10[%c0, %c0_0] : memref<1x128xf32, #tpu.memory_space<vmem>>, vector<1x128xf32>
    %c0_1 = arith.constant 0 : index
    %c0_2 = arith.constant 0 : index
    %1 = vector.load %arg0[%c0_1, %c0_2] : memref<1x16xbf16, #tpu.memory_space<vmem>>, vector<1x16xbf16>
    %c0_3 = arith.constant 0 : index
    %c0_4 = arith.constant 0 : index
    %2 = vector.load %arg4[%c0_3, %c0_4] : memref<16x128xbf16, #tpu.memory_space<vmem>>, vector<16x128xbf16>
    %cst = arith.constant dense<0.000000e+00> : vector<1x128xf32>
    %3 = tpu.matmul %1, %2, %cst {dimension_numbers = #tpu.dot_dimension_numbers<[1], [0], [0], [1], [0, 0, 1, 1], [], []>} : vector<1x16xbf16>, vector<16x128xbf16>, vector<1x128xf32> -> vector<1x128xf32>
    %4 = arith.addf %0, %3 : vector<1x128xf32>
    %c0_5 = arith.constant 0 : index
    %c0_6 = arith.constant 0 : index
    %5 = vector.load %arg1[%c0_5, %c0_6] : memref<8x16xbf16, #tpu.memory_space<vmem>>, vector<8x16xbf16>
    %c0_7 = arith.constant 0 : index
    %c0_8 = arith.constant 0 : index
    %6 = vector.load %arg8[%c0_7, %c0_8] : memref<16x128xbf16, #tpu.memory_space<vmem>>, vector<16x128xbf16>
    %cst_9 = arith.constant dense<0.000000e+00> : vector<8x128xf32>
    %7 = tpu.matmul %5, %6, %cst_9 {dimension_numbers = #tpu.dot_dimension_numbers<[1], [0], [0], [1], [0, 0, 1, 1], [], []>} : vector<8x16xbf16>, vector<16x128xbf16>, vector<8x128xf32> -> vector<8x128xf32>
    %8 = vector.broadcast %4 : vector<1x128xf32> to vector<8x128xf32>
    %9 = arith.addf %7, %8 : vector<8x128xf32>
    %c0_10 = arith.constant 0 : index
    %c0_11 = arith.constant 0 : index
    %10 = vector.load %arg9[%c0_10, %c0_11] : memref<32x128xbf16, #tpu.memory_space<vmem>>, vector<32x128xbf16>
    %c0_12 = arith.constant 0 : index
    %c0_13 = arith.constant 0 : index
    %11 = vector.load %arg11[%c0_12, %c0_13] : memref<64x128xbf16, #tpu.memory_space<vmem>>, vector<64x128xbf16>
    %c0_14 = arith.constant 0 : index
    %c0_15 = arith.constant 0 : index
    %12 = vector.load %arg12[%c0_14, %c0_15] : memref<1x128xf32, #tpu.memory_space<vmem>>, vector<1x128xf32>
    %cst_16 = arith.constant 0.000000e+00 : f32
    %13 = vector.broadcast %cst_16 : f32 to vector<1x32xf32>
    %14 = vector.extract_strided_slice %9 {offsets = [0, 0], sizes = [1, 128], strides = [1, 1]} : vector<8x128xf32> to vector<1x128xf32>
    %15 = arith.truncf %13 : vector<1x32xf32> to vector<1x32xbf16>
    %cst_17 = arith.constant dense<0.000000e+00> : vector<1x128xf32>
    %16 = tpu.matmul %15, %10, %cst_17 {dimension_numbers = #tpu.dot_dimension_numbers<[1], [0], [0], [1], [0, 0, 1, 1], [], []>} : vector<1x32xbf16>, vector<32x128xbf16>, vector<1x128xf32> -> vector<1x128xf32>
    %17 = arith.addf %14, %16 : vector<1x128xf32>
    %18 = arith.negf %17 : vector<1x128xf32>
    %19 = math.exp %18 : vector<1x128xf32>
    %cst_18 = arith.constant 1.000000e+00 : f32
    %20 = vector.broadcast %cst_18 : f32 to vector<1x128xf32>
    %21 = arith.addf %20, %19 : vector<1x128xf32>
    %22 = arith.divf %20, %21 : vector<1x128xf32>
    %23 = vector.extract_strided_slice %22 {offsets = [0, 0], sizes = [1, 32], strides = [1, 1]} : vector<1x128xf32> to vector<1x32xf32>
    %24 = vector.extract_strided_slice %22 {offsets = [0, 32], sizes = [1, 32], strides = [1, 1]} : vector<1x128xf32> to vector<1x32xf32>
    %25 = vector.extract_strided_slice %22 {offsets = [0, 64], sizes = [1, 32], strides = [1, 1]} : vector<1x128xf32> to vector<1x32xf32>
    %cst_19 = arith.constant 2.000000e+00 : f32
    %26 = vector.broadcast %cst_19 : f32 to vector<1x32xf32>
    %27 = arith.mulf %26, %25 : vector<1x32xf32>
    %cst_20 = arith.constant 1.000000e+00 : f32
    %28 = vector.broadcast %cst_20 : f32 to vector<1x32xf32>
    %29 = arith.subf %27, %28 : vector<1x32xf32>
    %30 = vector.extract_strided_slice %22 {offsets = [0, 96], sizes = [1, 32], strides = [1, 1]} : vector<1x128xf32> to vector<1x32xf32>
    %31 = arith.mulf %24, %13 : vector<1x32xf32>
    %32 = arith.mulf %23, %29 : vector<1x32xf32>
    %33 = arith.addf %31, %32 : vector<1x32xf32>
    %34 = math.tanh %33 : vector<1x32xf32>
    %35 = arith.mulf %30, %34 : vector<1x32xf32>
    %36 = tpu.concatenate %35, %13 in 1 : vector<1x32xf32>, vector<1x32xf32> -> vector<1x64xf32>
    %37 = arith.truncf %36 : vector<1x64xf32> to vector<1x64xbf16>
    %cst_21 = arith.constant dense<0.000000e+00> : vector<1x128xf32>
    %38 = tpu.matmul %37, %11, %cst_21 {dimension_numbers = #tpu.dot_dimension_numbers<[1], [0], [0], [1], [0, 0, 1, 1], [], []>} : vector<1x64xbf16>, vector<64x128xbf16>, vector<1x128xf32> -> vector<1x128xf32>
    %39 = arith.addf %12, %38 : vector<1x128xf32>
    %40 = arith.negf %39 : vector<1x128xf32>
    %41 = math.exp %40 : vector<1x128xf32>
    %cst_22 = arith.constant 1.000000e+00 : f32
    %42 = vector.broadcast %cst_22 : f32 to vector<1x128xf32>
    %43 = arith.addf %42, %41 : vector<1x128xf32>
    %44 = arith.divf %42, %43 : vector<1x128xf32>
    %45 = vector.extract_strided_slice %44 {offsets = [0, 0], sizes = [1, 32], strides = [1, 1]} : vector<1x128xf32> to vector<1x32xf32>
    %46 = vector.extract_strided_slice %44 {offsets = [0, 32], sizes = [1, 32], strides = [1, 1]} : vector<1x128xf32> to vector<1x32xf32>
    %47 = vector.extract_strided_slice %44 {offsets = [0, 64], sizes = [1, 32], strides = [1, 1]} : vector<1x128xf32> to vector<1x32xf32>
    %cst_23 = arith.constant 2.000000e+00 : f32
    %48 = vector.broadcast %cst_23 : f32 to vector<1x32xf32>
    %49 = arith.mulf %48, %47 : vector<1x32xf32>
    %cst_24 = arith.constant 1.000000e+00 : f32
    %50 = vector.broadcast %cst_24 : f32 to vector<1x32xf32>
    %51 = arith.subf %49, %50 : vector<1x32xf32>
    %52 = vector.extract_strided_slice %44 {offsets = [0, 96], sizes = [1, 32], strides = [1, 1]} : vector<1x128xf32> to vector<1x32xf32>
    %53 = arith.mulf %46, %13 : vector<1x32xf32>
    %54 = arith.mulf %45, %51 : vector<1x32xf32>
    %55 = arith.addf %53, %54 : vector<1x32xf32>
    %56 = math.tanh %55 : vector<1x32xf32>
    %57 = arith.mulf %52, %56 : vector<1x32xf32>
    %58 = vector.extract_strided_slice %9 {offsets = [1, 0], sizes = [1, 128], strides = [1, 1]} : vector<8x128xf32> to vector<1x128xf32>
    %59 = arith.truncf %35 : vector<1x32xf32> to vector<1x32xbf16>
    %cst_25 = arith.constant dense<0.000000e+00> : vector<1x128xf32>
    %60 = tpu.matmul %59, %10, %cst_25 {dimension_numbers = #tpu.dot_dimension_numbers<[1], [0], [0], [1], [0, 0, 1, 1], [], []>} : vector<1x32xbf16>, vector<32x128xbf16>, vector<1x128xf32> -> vector<1x128xf32>
    %61 = arith.addf %58, %60 : vector<1x128xf32>
    %62 = arith.negf %61 : vector<1x128xf32>
    %63 = math.exp %62 : vector<1x128xf32>
    %cst_26 = arith.constant 1.000000e+00 : f32
    %64 = vector.broadcast %cst_26 : f32 to vector<1x128xf32>
    %65 = arith.addf %64, %63 : vector<1x128xf32>
    %66 = arith.divf %64, %65 : vector<1x128xf32>
    %67 = vector.extract_strided_slice %66 {offsets = [0, 0], sizes = [1, 32], strides = [1, 1]} : vector<1x128xf32> to vector<1x32xf32>
    %68 = vector.extract_strided_slice %66 {offsets = [0, 32], sizes = [1, 32], strides = [1, 1]} : vector<1x128xf32> to vector<1x32xf32>
    %69 = vector.extract_strided_slice %66 {offsets = [0, 64], sizes = [1, 32], strides = [1, 1]} : vector<1x128xf32> to vector<1x32xf32>
    %cst_27 = arith.constant 2.000000e+00 : f32
    %70 = vector.broadcast %cst_27 : f32 to vector<1x32xf32>
    %71 = arith.mulf %70, %69 : vector<1x32xf32>
    %cst_28 = arith.constant 1.000000e+00 : f32
    %72 = vector.broadcast %cst_28 : f32 to vector<1x32xf32>
    %73 = arith.subf %71, %72 : vector<1x32xf32>
    %74 = vector.extract_strided_slice %66 {offsets = [0, 96], sizes = [1, 32], strides = [1, 1]} : vector<1x128xf32> to vector<1x32xf32>
    %75 = arith.mulf %68, %33 : vector<1x32xf32>
    %76 = arith.mulf %67, %73 : vector<1x32xf32>
    %77 = arith.addf %75, %76 : vector<1x32xf32>
    %78 = math.tanh %77 : vector<1x32xf32>
    %79 = arith.mulf %74, %78 : vector<1x32xf32>
    %80 = tpu.concatenate %79, %57 in 1 : vector<1x32xf32>, vector<1x32xf32> -> vector<1x64xf32>
    %81 = arith.truncf %80 : vector<1x64xf32> to vector<1x64xbf16>
    %cst_29 = arith.constant dense<0.000000e+00> : vector<1x128xf32>
    %82 = tpu.matmul %81, %11, %cst_29 {dimension_numbers = #tpu.dot_dimension_numbers<[1], [0], [0], [1], [0, 0, 1, 1], [], []>} : vector<1x64xbf16>, vector<64x128xbf16>, vector<1x128xf32> -> vector<1x128xf32>
    %83 = arith.addf %12, %82 : vector<1x128xf32>
    %84 = arith.negf %83 : vector<1x128xf32>
    %85 = math.exp %84 : vector<1x128xf32>
    %cst_30 = arith.constant 1.000000e+00 : f32
    %86 = vector.broadcast %cst_30 : f32 to vector<1x128xf32>
    %87 = arith.addf %86, %85 : vector<1x128xf32>
    %88 = arith.divf %86, %87 : vector<1x128xf32>
    %89 = vector.extract_strided_slice %88 {offsets = [0, 0], sizes = [1, 32], strides = [1, 1]} : vector<1x128xf32> to vector<1x32xf32>
    %90 = vector.extract_strided_slice %88 {offsets = [0, 32], sizes = [1, 32], strides = [1, 1]} : vector<1x128xf32> to vector<1x32xf32>
    %91 = vector.extract_strided_slice %88 {offsets = [0, 64], sizes = [1, 32], strides = [1, 1]} : vector<1x128xf32> to vector<1x32xf32>
    %cst_31 = arith.constant 2.000000e+00 : f32
    %92 = vector.broadcast %cst_31 : f32 to vector<1x32xf32>
    %93 = arith.mulf %92, %91 : vector<1x32xf32>
    %cst_32 = arith.constant 1.000000e+00 : f32
    %94 = vector.broadcast %cst_32 : f32 to vector<1x32xf32>
    %95 = arith.subf %93, %94 : vector<1x32xf32>
    %96 = vector.extract_strided_slice %88 {offsets = [0, 96], sizes = [1, 32], strides = [1, 1]} : vector<1x128xf32> to vector<1x32xf32>
    %97 = arith.mulf %90, %55 : vector<1x32xf32>
    %98 = arith.mulf %89, %95 : vector<1x32xf32>
    %99 = arith.addf %97, %98 : vector<1x32xf32>
    %100 = math.tanh %99 : vector<1x32xf32>
    %101 = arith.mulf %96, %100 : vector<1x32xf32>
    %102 = vector.extract_strided_slice %9 {offsets = [2, 0], sizes = [1, 128], strides = [1, 1]} : vector<8x128xf32> to vector<1x128xf32>
    %103 = arith.truncf %79 : vector<1x32xf32> to vector<1x32xbf16>
    %cst_33 = arith.constant dense<0.000000e+00> : vector<1x128xf32>
    %104 = tpu.matmul %103, %10, %cst_33 {dimension_numbers = #tpu.dot_dimension_numbers<[1], [0], [0], [1], [0, 0, 1, 1], [], []>} : vector<1x32xbf16>, vector<32x128xbf16>, vector<1x128xf32> -> vector<1x128xf32>
    %105 = arith.addf %102, %104 : vector<1x128xf32>
    %106 = arith.negf %105 : vector<1x128xf32>
    %107 = math.exp %106 : vector<1x128xf32>
    %cst_34 = arith.constant 1.000000e+00 : f32
    %108 = vector.broadcast %cst_34 : f32 to vector<1x128xf32>
    %109 = arith.addf %108, %107 : vector<1x128xf32>
    %110 = arith.divf %108, %109 : vector<1x128xf32>
    %111 = vector.extract_strided_slice %110 {offsets = [0, 0], sizes = [1, 32], strides = [1, 1]} : vector<1x128xf32> to vector<1x32xf32>
    %112 = vector.extract_strided_slice %110 {offsets = [0, 32], sizes = [1, 32], strides = [1, 1]} : vector<1x128xf32> to vector<1x32xf32>
    %113 = vector.extract_strided_slice %110 {offsets = [0, 64], sizes = [1, 32], strides = [1, 1]} : vector<1x128xf32> to vector<1x32xf32>
    %cst_35 = arith.constant 2.000000e+00 : f32
    %114 = vector.broadcast %cst_35 : f32 to vector<1x32xf32>
    %115 = arith.mulf %114, %113 : vector<1x32xf32>
    %cst_36 = arith.constant 1.000000e+00 : f32
    %116 = vector.broadcast %cst_36 : f32 to vector<1x32xf32>
    %117 = arith.subf %115, %116 : vector<1x32xf32>
    %118 = vector.extract_strided_slice %110 {offsets = [0, 96], sizes = [1, 32], strides = [1, 1]} : vector<1x128xf32> to vector<1x32xf32>
    %119 = arith.mulf %112, %77 : vector<1x32xf32>
    %120 = arith.mulf %111, %117 : vector<1x32xf32>
    %121 = arith.addf %119, %120 : vector<1x32xf32>
    %122 = math.tanh %121 : vector<1x32xf32>
    %123 = arith.mulf %118, %122 : vector<1x32xf32>
    %124 = tpu.concatenate %123, %101 in 1 : vector<1x32xf32>, vector<1x32xf32> -> vector<1x64xf32>
    %125 = arith.truncf %124 : vector<1x64xf32> to vector<1x64xbf16>
    %cst_37 = arith.constant dense<0.000000e+00> : vector<1x128xf32>
    %126 = tpu.matmul %125, %11, %cst_37 {dimension_numbers = #tpu.dot_dimension_numbers<[1], [0], [0], [1], [0, 0, 1, 1], [], []>} : vector<1x64xbf16>, vector<64x128xbf16>, vector<1x128xf32> -> vector<1x128xf32>
    %127 = arith.addf %12, %126 : vector<1x128xf32>
    %128 = arith.negf %127 : vector<1x128xf32>
    %129 = math.exp %128 : vector<1x128xf32>
    %cst_38 = arith.constant 1.000000e+00 : f32
    %130 = vector.broadcast %cst_38 : f32 to vector<1x128xf32>
    %131 = arith.addf %130, %129 : vector<1x128xf32>
    %132 = arith.divf %130, %131 : vector<1x128xf32>
    %133 = vector.extract_strided_slice %132 {offsets = [0, 0], sizes = [1, 32], strides = [1, 1]} : vector<1x128xf32> to vector<1x32xf32>
    %134 = vector.extract_strided_slice %132 {offsets = [0, 32], sizes = [1, 32], strides = [1, 1]} : vector<1x128xf32> to vector<1x32xf32>
    %135 = vector.extract_strided_slice %132 {offsets = [0, 64], sizes = [1, 32], strides = [1, 1]} : vector<1x128xf32> to vector<1x32xf32>
    %cst_39 = arith.constant 2.000000e+00 : f32
    %136 = vector.broadcast %cst_39 : f32 to vector<1x32xf32>
    %137 = arith.mulf %136, %135 : vector<1x32xf32>
    %cst_40 = arith.constant 1.000000e+00 : f32
    %138 = vector.broadcast %cst_40 : f32 to vector<1x32xf32>
    %139 = arith.subf %137, %138 : vector<1x32xf32>
    %140 = vector.extract_strided_slice %132 {offsets = [0, 96], sizes = [1, 32], strides = [1, 1]} : vector<1x128xf32> to vector<1x32xf32>
    %141 = arith.mulf %134, %99 : vector<1x32xf32>
    %142 = arith.mulf %133, %139 : vector<1x32xf32>
    %143 = arith.addf %141, %142 : vector<1x32xf32>
    %144 = math.tanh %143 : vector<1x32xf32>
    %145 = arith.mulf %140, %144 : vector<1x32xf32>
    %146 = vector.extract_strided_slice %9 {offsets = [3, 0], sizes = [1, 128], strides = [1, 1]} : vector<8x128xf32> to vector<1x128xf32>
    %147 = arith.truncf %123 : vector<1x32xf32> to vector<1x32xbf16>
    %cst_41 = arith.constant dense<0.000000e+00> : vector<1x128xf32>
    %148 = tpu.matmul %147, %10, %cst_41 {dimension_numbers = #tpu.dot_dimension_numbers<[1], [0], [0], [1], [0, 0, 1, 1], [], []>} : vector<1x32xbf16>, vector<32x128xbf16>, vector<1x128xf32> -> vector<1x128xf32>
    %149 = arith.addf %146, %148 : vector<1x128xf32>
    %150 = arith.negf %149 : vector<1x128xf32>
    %151 = math.exp %150 : vector<1x128xf32>
    %cst_42 = arith.constant 1.000000e+00 : f32
    %152 = vector.broadcast %cst_42 : f32 to vector<1x128xf32>
    %153 = arith.addf %152, %151 : vector<1x128xf32>
    %154 = arith.divf %152, %153 : vector<1x128xf32>
    %155 = vector.extract_strided_slice %154 {offsets = [0, 0], sizes = [1, 32], strides = [1, 1]} : vector<1x128xf32> to vector<1x32xf32>
    %156 = vector.extract_strided_slice %154 {offsets = [0, 32], sizes = [1, 32], strides = [1, 1]} : vector<1x128xf32> to vector<1x32xf32>
    %157 = vector.extract_strided_slice %154 {offsets = [0, 64], sizes = [1, 32], strides = [1, 1]} : vector<1x128xf32> to vector<1x32xf32>
    %cst_43 = arith.constant 2.000000e+00 : f32
    %158 = vector.broadcast %cst_43 : f32 to vector<1x32xf32>
    %159 = arith.mulf %158, %157 : vector<1x32xf32>
    %cst_44 = arith.constant 1.000000e+00 : f32
    %160 = vector.broadcast %cst_44 : f32 to vector<1x32xf32>
    %161 = arith.subf %159, %160 : vector<1x32xf32>
    %162 = vector.extract_strided_slice %154 {offsets = [0, 96], sizes = [1, 32], strides = [1, 1]} : vector<1x128xf32> to vector<1x32xf32>
    %163 = arith.mulf %156, %121 : vector<1x32xf32>
    %164 = arith.mulf %155, %161 : vector<1x32xf32>
    %165 = arith.addf %163, %164 : vector<1x32xf32>
    %166 = math.tanh %165 : vector<1x32xf32>
    %167 = arith.mulf %162, %166 : vector<1x32xf32>
    %168 = tpu.concatenate %167, %145 in 1 : vector<1x32xf32>, vector<1x32xf32> -> vector<1x64xf32>
    %169 = arith.truncf %168 : vector<1x64xf32> to vector<1x64xbf16>
    %cst_45 = arith.constant dense<0.000000e+00> : vector<1x128xf32>
    %170 = tpu.matmul %169, %11, %cst_45 {dimension_numbers = #tpu.dot_dimension_numbers<[1], [0], [0], [1], [0, 0, 1, 1], [], []>} : vector<1x64xbf16>, vector<64x128xbf16>, vector<1x128xf32> -> vector<1x128xf32>
    %171 = arith.addf %12, %170 : vector<1x128xf32>
    %172 = arith.negf %171 : vector<1x128xf32>
    %173 = math.exp %172 : vector<1x128xf32>
    %cst_46 = arith.constant 1.000000e+00 : f32
    %174 = vector.broadcast %cst_46 : f32 to vector<1x128xf32>
    %175 = arith.addf %174, %173 : vector<1x128xf32>
    %176 = arith.divf %174, %175 : vector<1x128xf32>
    %177 = vector.extract_strided_slice %176 {offsets = [0, 0], sizes = [1, 32], strides = [1, 1]} : vector<1x128xf32> to vector<1x32xf32>
    %178 = vector.extract_strided_slice %176 {offsets = [0, 32], sizes = [1, 32], strides = [1, 1]} : vector<1x128xf32> to vector<1x32xf32>
    %179 = vector.extract_strided_slice %176 {offsets = [0, 64], sizes = [1, 32], strides = [1, 1]} : vector<1x128xf32> to vector<1x32xf32>
    %cst_47 = arith.constant 2.000000e+00 : f32
    %180 = vector.broadcast %cst_47 : f32 to vector<1x32xf32>
    %181 = arith.mulf %180, %179 : vector<1x32xf32>
    %cst_48 = arith.constant 1.000000e+00 : f32
    %182 = vector.broadcast %cst_48 : f32 to vector<1x32xf32>
    %183 = arith.subf %181, %182 : vector<1x32xf32>
    %184 = vector.extract_strided_slice %176 {offsets = [0, 96], sizes = [1, 32], strides = [1, 1]} : vector<1x128xf32> to vector<1x32xf32>
    %185 = arith.mulf %178, %143 : vector<1x32xf32>
    %186 = arith.mulf %177, %183 : vector<1x32xf32>
    %187 = arith.addf %185, %186 : vector<1x32xf32>
    %188 = math.tanh %187 : vector<1x32xf32>
    %189 = arith.mulf %184, %188 : vector<1x32xf32>
    %190 = vector.extract_strided_slice %9 {offsets = [4, 0], sizes = [1, 128], strides = [1, 1]} : vector<8x128xf32> to vector<1x128xf32>
    %191 = arith.truncf %167 : vector<1x32xf32> to vector<1x32xbf16>
    %cst_49 = arith.constant dense<0.000000e+00> : vector<1x128xf32>
    %192 = tpu.matmul %191, %10, %cst_49 {dimension_numbers = #tpu.dot_dimension_numbers<[1], [0], [0], [1], [0, 0, 1, 1], [], []>} : vector<1x32xbf16>, vector<32x128xbf16>, vector<1x128xf32> -> vector<1x128xf32>
    %193 = arith.addf %190, %192 : vector<1x128xf32>
    %194 = arith.negf %193 : vector<1x128xf32>
    %195 = math.exp %194 : vector<1x128xf32>
    %cst_50 = arith.constant 1.000000e+00 : f32
    %196 = vector.broadcast %cst_50 : f32 to vector<1x128xf32>
    %197 = arith.addf %196, %195 : vector<1x128xf32>
    %198 = arith.divf %196, %197 : vector<1x128xf32>
    %199 = vector.extract_strided_slice %198 {offsets = [0, 0], sizes = [1, 32], strides = [1, 1]} : vector<1x128xf32> to vector<1x32xf32>
    %200 = vector.extract_strided_slice %198 {offsets = [0, 32], sizes = [1, 32], strides = [1, 1]} : vector<1x128xf32> to vector<1x32xf32>
    %201 = vector.extract_strided_slice %198 {offsets = [0, 64], sizes = [1, 32], strides = [1, 1]} : vector<1x128xf32> to vector<1x32xf32>
    %cst_51 = arith.constant 2.000000e+00 : f32
    %202 = vector.broadcast %cst_51 : f32 to vector<1x32xf32>
    %203 = arith.mulf %202, %201 : vector<1x32xf32>
    %cst_52 = arith.constant 1.000000e+00 : f32
    %204 = vector.broadcast %cst_52 : f32 to vector<1x32xf32>
    %205 = arith.subf %203, %204 : vector<1x32xf32>
    %206 = vector.extract_strided_slice %198 {offsets = [0, 96], sizes = [1, 32], strides = [1, 1]} : vector<1x128xf32> to vector<1x32xf32>
    %207 = arith.mulf %200, %165 : vector<1x32xf32>
    %208 = arith.mulf %199, %205 : vector<1x32xf32>
    %209 = arith.addf %207, %208 : vector<1x32xf32>
    %210 = math.tanh %209 : vector<1x32xf32>
    %211 = arith.mulf %206, %210 : vector<1x32xf32>
    %212 = tpu.concatenate %211, %189 in 1 : vector<1x32xf32>, vector<1x32xf32> -> vector<1x64xf32>
    %213 = arith.truncf %212 : vector<1x64xf32> to vector<1x64xbf16>
    %cst_53 = arith.constant dense<0.000000e+00> : vector<1x128xf32>
    %214 = tpu.matmul %213, %11, %cst_53 {dimension_numbers = #tpu.dot_dimension_numbers<[1], [0], [0], [1], [0, 0, 1, 1], [], []>} : vector<1x64xbf16>, vector<64x128xbf16>, vector<1x128xf32> -> vector<1x128xf32>
    %215 = arith.addf %12, %214 : vector<1x128xf32>
    %216 = arith.negf %215 : vector<1x128xf32>
    %217 = math.exp %216 : vector<1x128xf32>
    %cst_54 = arith.constant 1.000000e+00 : f32
    %218 = vector.broadcast %cst_54 : f32 to vector<1x128xf32>
    %219 = arith.addf %218, %217 : vector<1x128xf32>
    %220 = arith.divf %218, %219 : vector<1x128xf32>
    %221 = vector.extract_strided_slice %220 {offsets = [0, 0], sizes = [1, 32], strides = [1, 1]} : vector<1x128xf32> to vector<1x32xf32>
    %222 = vector.extract_strided_slice %220 {offsets = [0, 32], sizes = [1, 32], strides = [1, 1]} : vector<1x128xf32> to vector<1x32xf32>
    %223 = vector.extract_strided_slice %220 {offsets = [0, 64], sizes = [1, 32], strides = [1, 1]} : vector<1x128xf32> to vector<1x32xf32>
    %cst_55 = arith.constant 2.000000e+00 : f32
    %224 = vector.broadcast %cst_55 : f32 to vector<1x32xf32>
    %225 = arith.mulf %224, %223 : vector<1x32xf32>
    %cst_56 = arith.constant 1.000000e+00 : f32
    %226 = vector.broadcast %cst_56 : f32 to vector<1x32xf32>
    %227 = arith.subf %225, %226 : vector<1x32xf32>
    %228 = vector.extract_strided_slice %220 {offsets = [0, 96], sizes = [1, 32], strides = [1, 1]} : vector<1x128xf32> to vector<1x32xf32>
    %229 = arith.mulf %222, %187 : vector<1x32xf32>
    %230 = arith.mulf %221, %227 : vector<1x32xf32>
    %231 = arith.addf %229, %230 : vector<1x32xf32>
    %232 = math.tanh %231 : vector<1x32xf32>
    %233 = arith.mulf %228, %232 : vector<1x32xf32>
    %234 = vector.extract_strided_slice %9 {offsets = [5, 0], sizes = [1, 128], strides = [1, 1]} : vector<8x128xf32> to vector<1x128xf32>
    %235 = arith.truncf %211 : vector<1x32xf32> to vector<1x32xbf16>
    %cst_57 = arith.constant dense<0.000000e+00> : vector<1x128xf32>
    %236 = tpu.matmul %235, %10, %cst_57 {dimension_numbers = #tpu.dot_dimension_numbers<[1], [0], [0], [1], [0, 0, 1, 1], [], []>} : vector<1x32xbf16>, vector<32x128xbf16>, vector<1x128xf32> -> vector<1x128xf32>
    %237 = arith.addf %234, %236 : vector<1x128xf32>
    %238 = arith.negf %237 : vector<1x128xf32>
    %239 = math.exp %238 : vector<1x128xf32>
    %cst_58 = arith.constant 1.000000e+00 : f32
    %240 = vector.broadcast %cst_58 : f32 to vector<1x128xf32>
    %241 = arith.addf %240, %239 : vector<1x128xf32>
    %242 = arith.divf %240, %241 : vector<1x128xf32>
    %243 = vector.extract_strided_slice %242 {offsets = [0, 0], sizes = [1, 32], strides = [1, 1]} : vector<1x128xf32> to vector<1x32xf32>
    %244 = vector.extract_strided_slice %242 {offsets = [0, 32], sizes = [1, 32], strides = [1, 1]} : vector<1x128xf32> to vector<1x32xf32>
    %245 = vector.extract_strided_slice %242 {offsets = [0, 64], sizes = [1, 32], strides = [1, 1]} : vector<1x128xf32> to vector<1x32xf32>
    %cst_59 = arith.constant 2.000000e+00 : f32
    %246 = vector.broadcast %cst_59 : f32 to vector<1x32xf32>
    %247 = arith.mulf %246, %245 : vector<1x32xf32>
    %cst_60 = arith.constant 1.000000e+00 : f32
    %248 = vector.broadcast %cst_60 : f32 to vector<1x32xf32>
    %249 = arith.subf %247, %248 : vector<1x32xf32>
    %250 = vector.extract_strided_slice %242 {offsets = [0, 96], sizes = [1, 32], strides = [1, 1]} : vector<1x128xf32> to vector<1x32xf32>
    %251 = arith.mulf %244, %209 : vector<1x32xf32>
    %252 = arith.mulf %243, %249 : vector<1x32xf32>
    %253 = arith.addf %251, %252 : vector<1x32xf32>
    %254 = math.tanh %253 : vector<1x32xf32>
    %255 = arith.mulf %250, %254 : vector<1x32xf32>
    %256 = tpu.concatenate %255, %233 in 1 : vector<1x32xf32>, vector<1x32xf32> -> vector<1x64xf32>
    %257 = arith.truncf %256 : vector<1x64xf32> to vector<1x64xbf16>
    %cst_61 = arith.constant dense<0.000000e+00> : vector<1x128xf32>
    %258 = tpu.matmul %257, %11, %cst_61 {dimension_numbers = #tpu.dot_dimension_numbers<[1], [0], [0], [1], [0, 0, 1, 1], [], []>} : vector<1x64xbf16>, vector<64x128xbf16>, vector<1x128xf32> -> vector<1x128xf32>
    %259 = arith.addf %12, %258 : vector<1x128xf32>
    %260 = arith.negf %259 : vector<1x128xf32>
    %261 = math.exp %260 : vector<1x128xf32>
    %cst_62 = arith.constant 1.000000e+00 : f32
    %262 = vector.broadcast %cst_62 : f32 to vector<1x128xf32>
    %263 = arith.addf %262, %261 : vector<1x128xf32>
    %264 = arith.divf %262, %263 : vector<1x128xf32>
    %265 = vector.extract_strided_slice %264 {offsets = [0, 0], sizes = [1, 32], strides = [1, 1]} : vector<1x128xf32> to vector<1x32xf32>
    %266 = vector.extract_strided_slice %264 {offsets = [0, 32], sizes = [1, 32], strides = [1, 1]} : vector<1x128xf32> to vector<1x32xf32>
    %267 = vector.extract_strided_slice %264 {offsets = [0, 64], sizes = [1, 32], strides = [1, 1]} : vector<1x128xf32> to vector<1x32xf32>
    %cst_63 = arith.constant 2.000000e+00 : f32
    %268 = vector.broadcast %cst_63 : f32 to vector<1x32xf32>
    %269 = arith.mulf %268, %267 : vector<1x32xf32>
    %cst_64 = arith.constant 1.000000e+00 : f32
    %270 = vector.broadcast %cst_64 : f32 to vector<1x32xf32>
    %271 = arith.subf %269, %270 : vector<1x32xf32>
    %272 = vector.extract_strided_slice %264 {offsets = [0, 96], sizes = [1, 32], strides = [1, 1]} : vector<1x128xf32> to vector<1x32xf32>
    %273 = arith.mulf %266, %231 : vector<1x32xf32>
    %274 = arith.mulf %265, %271 : vector<1x32xf32>
    %275 = arith.addf %273, %274 : vector<1x32xf32>
    %276 = math.tanh %275 : vector<1x32xf32>
    %277 = arith.mulf %272, %276 : vector<1x32xf32>
    %278 = vector.extract_strided_slice %9 {offsets = [6, 0], sizes = [1, 128], strides = [1, 1]} : vector<8x128xf32> to vector<1x128xf32>
    %279 = arith.truncf %255 : vector<1x32xf32> to vector<1x32xbf16>
    %cst_65 = arith.constant dense<0.000000e+00> : vector<1x128xf32>
    %280 = tpu.matmul %279, %10, %cst_65 {dimension_numbers = #tpu.dot_dimension_numbers<[1], [0], [0], [1], [0, 0, 1, 1], [], []>} : vector<1x32xbf16>, vector<32x128xbf16>, vector<1x128xf32> -> vector<1x128xf32>
    %281 = arith.addf %278, %280 : vector<1x128xf32>
    %282 = arith.negf %281 : vector<1x128xf32>
    %283 = math.exp %282 : vector<1x128xf32>
    %cst_66 = arith.constant 1.000000e+00 : f32
    %284 = vector.broadcast %cst_66 : f32 to vector<1x128xf32>
    %285 = arith.addf %284, %283 : vector<1x128xf32>
    %286 = arith.divf %284, %285 : vector<1x128xf32>
    %287 = vector.extract_strided_slice %286 {offsets = [0, 0], sizes = [1, 32], strides = [1, 1]} : vector<1x128xf32> to vector<1x32xf32>
    %288 = vector.extract_strided_slice %286 {offsets = [0, 32], sizes = [1, 32], strides = [1, 1]} : vector<1x128xf32> to vector<1x32xf32>
    %289 = vector.extract_strided_slice %286 {offsets = [0, 64], sizes = [1, 32], strides = [1, 1]} : vector<1x128xf32> to vector<1x32xf32>
    %cst_67 = arith.constant 2.000000e+00 : f32
    %290 = vector.broadcast %cst_67 : f32 to vector<1x32xf32>
    %291 = arith.mulf %290, %289 : vector<1x32xf32>
    %cst_68 = arith.constant 1.000000e+00 : f32
    %292 = vector.broadcast %cst_68 : f32 to vector<1x32xf32>
    %293 = arith.subf %291, %292 : vector<1x32xf32>
    %294 = vector.extract_strided_slice %286 {offsets = [0, 96], sizes = [1, 32], strides = [1, 1]} : vector<1x128xf32> to vector<1x32xf32>
    %295 = arith.mulf %288, %253 : vector<1x32xf32>
    %296 = arith.mulf %287, %293 : vector<1x32xf32>
    %297 = arith.addf %295, %296 : vector<1x32xf32>
    %298 = math.tanh %297 : vector<1x32xf32>
    %299 = arith.mulf %294, %298 : vector<1x32xf32>
    %300 = tpu.concatenate %299, %277 in 1 : vector<1x32xf32>, vector<1x32xf32> -> vector<1x64xf32>
    %301 = arith.truncf %300 : vector<1x64xf32> to vector<1x64xbf16>
    %cst_69 = arith.constant dense<0.000000e+00> : vector<1x128xf32>
    %302 = tpu.matmul %301, %11, %cst_69 {dimension_numbers = #tpu.dot_dimension_numbers<[1], [0], [0], [1], [0, 0, 1, 1], [], []>} : vector<1x64xbf16>, vector<64x128xbf16>, vector<1x128xf32> -> vector<1x128xf32>
    %303 = arith.addf %12, %302 : vector<1x128xf32>
    %304 = arith.negf %303 : vector<1x128xf32>
    %305 = math.exp %304 : vector<1x128xf32>
    %cst_70 = arith.constant 1.000000e+00 : f32
    %306 = vector.broadcast %cst_70 : f32 to vector<1x128xf32>
    %307 = arith.addf %306, %305 : vector<1x128xf32>
    %308 = arith.divf %306, %307 : vector<1x128xf32>
    %309 = vector.extract_strided_slice %308 {offsets = [0, 0], sizes = [1, 32], strides = [1, 1]} : vector<1x128xf32> to vector<1x32xf32>
    %310 = vector.extract_strided_slice %308 {offsets = [0, 32], sizes = [1, 32], strides = [1, 1]} : vector<1x128xf32> to vector<1x32xf32>
    %311 = vector.extract_strided_slice %308 {offsets = [0, 64], sizes = [1, 32], strides = [1, 1]} : vector<1x128xf32> to vector<1x32xf32>
    %cst_71 = arith.constant 2.000000e+00 : f32
    %312 = vector.broadcast %cst_71 : f32 to vector<1x32xf32>
    %313 = arith.mulf %312, %311 : vector<1x32xf32>
    %cst_72 = arith.constant 1.000000e+00 : f32
    %314 = vector.broadcast %cst_72 : f32 to vector<1x32xf32>
    %315 = arith.subf %313, %314 : vector<1x32xf32>
    %316 = vector.extract_strided_slice %308 {offsets = [0, 96], sizes = [1, 32], strides = [1, 1]} : vector<1x128xf32> to vector<1x32xf32>
    %317 = arith.mulf %310, %275 : vector<1x32xf32>
    %318 = arith.mulf %309, %315 : vector<1x32xf32>
    %319 = arith.addf %317, %318 : vector<1x32xf32>
    %320 = math.tanh %319 : vector<1x32xf32>
    %321 = arith.mulf %316, %320 : vector<1x32xf32>
    %322 = vector.extract_strided_slice %9 {offsets = [7, 0], sizes = [1, 128], strides = [1, 1]} : vector<8x128xf32> to vector<1x128xf32>
    %323 = arith.truncf %299 : vector<1x32xf32> to vector<1x32xbf16>
    %cst_73 = arith.constant dense<0.000000e+00> : vector<1x128xf32>
    %324 = tpu.matmul %323, %10, %cst_73 {dimension_numbers = #tpu.dot_dimension_numbers<[1], [0], [0], [1], [0, 0, 1, 1], [], []>} : vector<1x32xbf16>, vector<32x128xbf16>, vector<1x128xf32> -> vector<1x128xf32>
    %325 = arith.addf %322, %324 : vector<1x128xf32>
    %326 = arith.negf %325 : vector<1x128xf32>
    %327 = math.exp %326 : vector<1x128xf32>
    %cst_74 = arith.constant 1.000000e+00 : f32
    %328 = vector.broadcast %cst_74 : f32 to vector<1x128xf32>
    %329 = arith.addf %328, %327 : vector<1x128xf32>
    %330 = arith.divf %328, %329 : vector<1x128xf32>
    %331 = vector.extract_strided_slice %330 {offsets = [0, 0], sizes = [1, 32], strides = [1, 1]} : vector<1x128xf32> to vector<1x32xf32>
    %332 = vector.extract_strided_slice %330 {offsets = [0, 32], sizes = [1, 32], strides = [1, 1]} : vector<1x128xf32> to vector<1x32xf32>
    %333 = vector.extract_strided_slice %330 {offsets = [0, 64], sizes = [1, 32], strides = [1, 1]} : vector<1x128xf32> to vector<1x32xf32>
    %cst_75 = arith.constant 2.000000e+00 : f32
    %334 = vector.broadcast %cst_75 : f32 to vector<1x32xf32>
    %335 = arith.mulf %334, %333 : vector<1x32xf32>
    %cst_76 = arith.constant 1.000000e+00 : f32
    %336 = vector.broadcast %cst_76 : f32 to vector<1x32xf32>
    %337 = arith.subf %335, %336 : vector<1x32xf32>
    %338 = vector.extract_strided_slice %330 {offsets = [0, 96], sizes = [1, 32], strides = [1, 1]} : vector<1x128xf32> to vector<1x32xf32>
    %339 = arith.mulf %332, %297 : vector<1x32xf32>
    %340 = arith.mulf %331, %337 : vector<1x32xf32>
    %341 = arith.addf %339, %340 : vector<1x32xf32>
    %342 = math.tanh %341 : vector<1x32xf32>
    %343 = arith.mulf %338, %342 : vector<1x32xf32>
    %344 = tpu.concatenate %343, %321 in 1 : vector<1x32xf32>, vector<1x32xf32> -> vector<1x64xf32>
    %345 = arith.truncf %344 : vector<1x64xf32> to vector<1x64xbf16>
    %cst_77 = arith.constant dense<0.000000e+00> : vector<1x128xf32>
    %346 = tpu.matmul %345, %11, %cst_77 {dimension_numbers = #tpu.dot_dimension_numbers<[1], [0], [0], [1], [0, 0, 1, 1], [], []>} : vector<1x64xbf16>, vector<64x128xbf16>, vector<1x128xf32> -> vector<1x128xf32>
    %347 = arith.addf %12, %346 : vector<1x128xf32>
    %348 = arith.negf %347 : vector<1x128xf32>
    %349 = math.exp %348 : vector<1x128xf32>
    %cst_78 = arith.constant 1.000000e+00 : f32
    %350 = vector.broadcast %cst_78 : f32 to vector<1x128xf32>
    %351 = arith.addf %350, %349 : vector<1x128xf32>
    %352 = arith.divf %350, %351 : vector<1x128xf32>
    %353 = vector.extract_strided_slice %352 {offsets = [0, 0], sizes = [1, 32], strides = [1, 1]} : vector<1x128xf32> to vector<1x32xf32>
    %354 = vector.extract_strided_slice %352 {offsets = [0, 32], sizes = [1, 32], strides = [1, 1]} : vector<1x128xf32> to vector<1x32xf32>
    %355 = vector.extract_strided_slice %352 {offsets = [0, 64], sizes = [1, 32], strides = [1, 1]} : vector<1x128xf32> to vector<1x32xf32>
    %cst_79 = arith.constant 2.000000e+00 : f32
    %356 = vector.broadcast %cst_79 : f32 to vector<1x32xf32>
    %357 = arith.mulf %356, %355 : vector<1x32xf32>
    %cst_80 = arith.constant 1.000000e+00 : f32
    %358 = vector.broadcast %cst_80 : f32 to vector<1x32xf32>
    %359 = arith.subf %357, %358 : vector<1x32xf32>
    %360 = vector.extract_strided_slice %352 {offsets = [0, 96], sizes = [1, 32], strides = [1, 1]} : vector<1x128xf32> to vector<1x32xf32>
    %361 = arith.mulf %354, %319 : vector<1x32xf32>
    %362 = arith.mulf %353, %359 : vector<1x32xf32>
    %363 = arith.addf %361, %362 : vector<1x32xf32>
    %364 = math.tanh %363 : vector<1x32xf32>
    %365 = arith.mulf %360, %364 : vector<1x32xf32>
    %366 = tpu.concatenate %57, %101, %145, %189, %233, %277, %321, %365 in 0 : vector<1x32xf32>, vector<1x32xf32>, vector<1x32xf32>, vector<1x32xf32>, vector<1x32xf32>, vector<1x32xf32>, vector<1x32xf32>, vector<1x32xf32> -> vector<8x32xf32>
    %367 = arith.truncf %366 : vector<8x32xf32> to vector<8x32xbf16>
    %c0_81 = arith.constant 0 : index
    %c0_82 = arith.constant 0 : index
    %368 = vector.load %arg3[%c0_81, %c0_82] : memref<32x8xbf16, #tpu.memory_space<vmem>>, vector<32x8xbf16>
    %cst_83 = arith.constant dense<0.000000e+00> : vector<8x8xf32>
    %369 = tpu.matmul %367, %368, %cst_83 {dimension_numbers = #tpu.dot_dimension_numbers<[1], [0], [0], [1], [0, 0, 1, 1], [], []>} : vector<8x32xbf16>, vector<32x8xbf16>, vector<8x8xf32> -> vector<8x8xf32>
    %cst_84 = arith.constant dense<0xFF800000> : vector<8xf32>
    %370 = vector.multi_reduction <maximumf>, %369, %cst_84 [1] : vector<8x8xf32> to vector<8xf32>
    %371 = vector.shape_cast %370 : vector<8xf32> to vector<8x1xf32>
    %372 = vector.broadcast %371 : vector<8x1xf32> to vector<8x8xf32>
    %373 = arith.subf %369, %372 : vector<8x8xf32>
    %374 = math.exp %373 : vector<8x8xf32>
    %cst_85 = arith.constant dense<0.000000e+00> : vector<8xf32>
    %375 = vector.multi_reduction <add>, %374, %cst_85 [1] : vector<8x8xf32> to vector<8xf32>
    %376 = vector.shape_cast %375 : vector<8xf32> to vector<8x1xf32>
    %377 = tpu.reciprocal %376 {approx = true} : vector<8x1xf32> -> vector<8x1xf32>
    %378 = vector.broadcast %377 : vector<8x1xf32> to vector<8x8xf32>
    %379 = arith.mulf %374, %378 : vector<8x8xf32>
    %380 = arith.truncf %379 : vector<8x8xf32> to vector<8x8xbf16>
    %c0_86 = arith.constant 0 : index
    %c0_87 = arith.constant 0 : index
    %381 = vector.load %arg2[%c0_86, %c0_87] : memref<8x32xbf16, #tpu.memory_space<vmem>>, vector<8x32xbf16>
    %cst_88 = arith.constant dense<0.000000e+00> : vector<8x32xf32>
    %382 = tpu.matmul %380, %381, %cst_88 {dimension_numbers = #tpu.dot_dimension_numbers<[1], [0], [0], [1], [0, 0, 1, 1], [], []>} : vector<8x8xbf16>, vector<8x32xbf16>, vector<8x32xf32> -> vector<8x32xf32>
    %c0_89 = arith.constant 0 : index
    %c0_90 = arith.constant 0 : index
    %383 = vector.load %arg5[%c0_89, %c0_90] : memref<32x128xbf16, #tpu.memory_space<vmem>>, vector<32x128xbf16>
    %cst_91 = arith.constant dense<0.000000e+00> : vector<8x128xf32>
    %384 = tpu.matmul %367, %383, %cst_91 {dimension_numbers = #tpu.dot_dimension_numbers<[1], [0], [0], [1], [0, 0, 1, 1], [], []>} : vector<8x32xbf16>, vector<32x128xbf16>, vector<8x128xf32> -> vector<8x128xf32>
    %385 = arith.truncf %382 : vector<8x32xf32> to vector<8x32xbf16>
    %c0_92 = arith.constant 0 : index
    %c0_93 = arith.constant 0 : index
    %386 = vector.load %arg6[%c0_92, %c0_93] : memref<32x128xbf16, #tpu.memory_space<vmem>>, vector<32x128xbf16>
    %cst_94 = arith.constant dense<0.000000e+00> : vector<8x128xf32>
    %387 = tpu.matmul %385, %386, %cst_94 {dimension_numbers = #tpu.dot_dimension_numbers<[1], [0], [0], [1], [0, 0, 1, 1], [], []>} : vector<8x32xbf16>, vector<32x128xbf16>, vector<8x128xf32> -> vector<8x128xf32>
    %388 = arith.addf %384, %387 : vector<8x128xf32>
    %c0_95 = arith.constant 0 : index
    %c0_96 = arith.constant 0 : index
    %389 = vector.load %arg7[%c0_95, %c0_96] : memref<1x128xf32, #tpu.memory_space<vmem>>, vector<1x128xf32>
    %390 = vector.broadcast %389 : vector<1x128xf32> to vector<8x128xf32>
    %391 = arith.addf %388, %390 : vector<8x128xf32>
    %cst_97 = arith.constant dense<0xFF800000> : vector<8xf32>
    %392 = vector.multi_reduction <maximumf>, %391, %cst_97 [1] : vector<8x128xf32> to vector<8xf32>
    %393 = vector.shape_cast %392 : vector<8xf32> to vector<8x1xf32>
    %394 = vector.broadcast %393 : vector<8x1xf32> to vector<8x128xf32>
    %395 = arith.subf %391, %394 : vector<8x128xf32>
    %396 = math.exp %395 : vector<8x128xf32>
    %cst_98 = arith.constant dense<0.000000e+00> : vector<8xf32>
    %397 = vector.multi_reduction <add>, %396, %cst_98 [1] : vector<8x128xf32> to vector<8xf32>
    %398 = vector.shape_cast %397 : vector<8xf32> to vector<8x1xf32>
    %399 = vector.broadcast %398 : vector<8x1xf32> to vector<8x128xf32>
    %400 = arith.divf %396, %399 : vector<8x128xf32>
    %c0_99 = arith.constant 0 : index
    %c0_100 = arith.constant 0 : index
    %401 = vector.load %arg13[%c0_99, %c0_100] : memref<8x128xf32, #tpu.memory_space<vmem>>, vector<8x128xf32>
    tpu.vector_store %arg13[%c0_99, %c0_100], %400 {strides = array<i32>} : memref<8x128xf32, #tpu.memory_space<vmem>>, vector<8x128xf32>,
    return
  }
}

</mosaic_0001>

<bundles_post_ra>
// kernel: tpu_custom_call.1
= control target key start
LH: loop header
LB: loop body
LE: loop exit
PB: predicated region body
PF: predicated region fallthrough
CT: control target
= control target key end

     0   :  { %18 = vsyncpa [#allocation3], 0  ;;  %s3134_s0 = inlined_call_operand.vmem [shape: bf16[1,16], index: 0, kind: input, shape index: {}]   ;;  %s3135_s1 = inlined_call_operand.vmem [shape: bf16[8,16], index: 1, kind: input, shape index: {}]   ;;  %s3136_s2 = inlined_call_operand.hbm [shape: bf16[8,32], index: 2, kind: input, shape index: {}]   ;;  %s3137_s3 = inlined_call_operand.vmem [shape: bf16[32,8], index: 3, kind: input, shape index: {}]   ;;  %s3138_s4 = inlined_call_operand.vmem [shape: bf16[16,128], index: 4, kind: input, shape index: {}]   ;;  %s3139_s5 = inlined_call_operand.vmem [shape: bf16[32,128], index: 5, kind: input, shape index: {}]   ;;  %s3140_s6 = inlined_call_operand.hbm [shape: bf16[32,128], index: 6, kind: input, shape index: {}]   ;;  %s3141_s7 = inlined_call_operand.hbm [shape: f32[1,128], index: 7, kind: input, shape index: {}]   ;;  %s3142_s8 = inlined_call_operand.hbm [shape: bf16[16,128], index: 8, kind: input, shape index: {}]   ;;  %s3143_s9 = inlined_call_operand.hbm [shape: bf16[32,128], index: 9, kind: input, shape index: {}]   ;;  %s3144_s10 = inlined_call_operand.hbm [shape: f32[1,128], index: 10, kind: input, shape index: {}]   ;;  %s3145_s11 = inlined_call_operand.vmem [shape: bf16[64,128], index: 11, kind: input, shape index: {}]   ;;  %s3146_s12 = inlined_call_operand.vmem [shape: f32[1,128], index: 12, kind: input, shape index: {}]   ;;  %s3147_s13 = inlined_call_operand.hbm [shape: f32[8,128], index: 13, kind: output, shape index: {}]  }
   0x1   :  { %19 = vsyncpa [#allocation6], 0 }
   0x2   :  { %20 = vsyncpa [#allocation9], 0 }
   0x3   :  { %21 = vsyncpa [#allocation12], 0 }
   0x4   :  { %22 = vsyncpa [#allocation4], 0  ;;  %s2548_s25 = smov [#allocation5]   ;;  %s2384_s29 = scalar_lea.hbm %s3140_s6, 256 }
   0x5   :  { %s48_s26 = sshll.u32 %s2548_s25, 4  ;;  %p2385_p0 = scmp.ne.s32.totalorder %s3140_s6, %s2384_s29  ;;  %s49_s26 = int_to_ptr.vmem [resolvable:$true] %s48_s26 }
   0x6   :  { %p2388_p1 = scmp.lt.u32.totalorder %s2384_s29, %s3140_s6 }
   0x8   :  { %p2390_p2 = pnand %p2388_p1, %p2385_p0 }
   0xa   :  { %2393 = shalt.err (!%p2390_p2)
}
   0xb   :  { %s2394_s17 = scalar_lea.vmem %s49_s26, 256  ;;  %p2399_p4 = scmp.lt.s32.totalorder %s49_s26, %s49_s26 }
   0xc   :  { %p2395_p3 = scmp.ne.s32.totalorder %s49_s26, %s2394_s17  ;;  %p2400_p5 = scmp.lt.s32.totalorder %s2394_s17, %s2394_s17 }
   0xe   :  { %p2401_p6 = por %p2400_p5, %p2399_p4 }
  0x10   :  { %p2402_p7 = pnand %p2401_p6, %p2395_p3 }
  0x12   :  { %2405 = shalt.err (!%p2402_p7)
}
  0x13   :  { %s2549_s18 = smov 64   ;;  %s2550_s19 = smov 4  }
  0x14   :  { %54 = dma.hbm_to_vmem [thread:$0]  %s3140_s6, 256, %s49_s26, [#allocation6], %s2549_s18, %s2549_s18, %s2550_s19  }
  0x15   :  { %s2551_s22 = smov [#allocation8]   ;;  %s2552_s24 = smov [#allocation2]  }
  0x16   :  { %s70_s23 = sshll.u32 %s2551_s22, 4  ;;  %s33_s25 = sshll.u32 %s2552_s24, 4  ;;  %s71_s23 = int_to_ptr.vmem [resolvable:$true] %s70_s23  ;;  %s34_s25 = int_to_ptr.vmem [resolvable:$true] %s33_s25 }
  0x17   :  { %s2406_s29 = scalar_lea.hbm %s3142_s8, 128 }
  0x18   :  { %p2407_p8 = scmp.ne.s32.totalorder %s3142_s8, %s2406_s29  ;;  %p2410_p9 = scmp.lt.u32.totalorder %s2406_s29, %s3142_s8 }
  0x1a   :  { %p2412_p10 = pnand %p2410_p9, %p2407_p8 }
  0x1c   :  { %2415 = shalt.err (!%p2412_p10)
}
  0x1d   :  { %s2416_s6 = scalar_lea.vmem %s71_s23, 128  ;;  %p2421_p12 = scmp.lt.s32.totalorder %s71_s23, %s71_s23 }
  0x1e   :  { %p2417_p11 = scmp.ne.s32.totalorder %s71_s23, %s2416_s6  ;;  %p2422_p13 = scmp.lt.s32.totalorder %s2416_s6, %s2416_s6 }
  0x20   :  { %p2423_p0 = por %p2422_p13, %p2421_p12 }
  0x22   :  { %p2424_p1 = pnand %p2423_p0, %p2417_p11 }
  0x24   :  { %2427 = shalt.err (!%p2424_p1)
}
  0x25   :  { %76 = dma.hbm_to_vmem [thread:$0]  %s3142_s8, 128, %s71_s23, [#allocation9], %s2549_s18, %s2549_s18, %s2550_s19  }
  0x26   :  { %s2428_s22 = scalar_lea.hbm %s3136_s2, 64 }
  0x27   :  { %p2429_p2 = scmp.ne.s32.totalorder %s3136_s2, %s2428_s22  ;;  %p2432_p3 = scmp.lt.u32.totalorder %s2428_s22, %s3136_s2 }
  0x29   :  { %p2434_p4 = pnand %p2432_p3, %p2429_p2 }
  0x2b   :  { %2437 = shalt.err (!%p2434_p4)
}
  0x2c   :  { %s2438_s30 = scalar_lea.vmem %s34_s25, 64  ;;  %p2443_p6 = scmp.lt.s32.totalorder %s34_s25, %s34_s25 }
  0x2d   :  { %p2439_p5 = scmp.ne.s32.totalorder %s34_s25, %s2438_s30  ;;  %p2444_p7 = scmp.lt.s32.totalorder %s2438_s30, %s2438_s30 }
  0x2f   :  { %p2445_p8 = por %p2444_p7, %p2443_p6 }
  0x31   :  { %p2446_p9 = pnand %p2445_p8, %p2439_p5 }
  0x33   :  { %2449 = shalt.err (!%p2446_p9)
}
  0x34   :  { %36 = dma.hbm_to_vmem [thread:$0]  %s3136_s2, 64, %s34_s25, [#allocation3]  }
  0x35   :  { %s2553_s14 = smov [#allocation7]   ;;  %s2554_s16 = smov [#allocation10]  }
  0x36   :  { %s61_s15 = sshll.u32 %s2553_s14, 4  ;;  %s82_s6 = sshll.u32 %s2554_s16, 4  ;;  %s62_s15 = int_to_ptr.vmem [resolvable:$true] %s61_s15  ;;  %s83_s6 = int_to_ptr.vmem [resolvable:$true] %s82_s6 }
  0x37   :  { %s2450_s20 = scalar_lea.hbm %s3141_s7, 16 }
  0x38   :  { %p2451_p10 = scmp.ne.s32.totalorder %s3141_s7, %s2450_s20  ;;  %p2454_p11 = scmp.lt.u32.totalorder %s2450_s20, %s3141_s7 }
  0x3a   :  { %p2456_p12 = pnand %p2454_p11, %p2451_p10 }
  0x3c   :  { %2459 = shalt.err (!%p2456_p12)
}
  0x3d   :  { %s2460_s2 = scalar_lea.vmem %s62_s15, 16  ;;  %s2464_s25 = scalar_lea.vmem %s62_s15, 32 }
  0x3e   :  { %p2461_p13 = scmp.ne.s32.totalorder %s62_s15, %s2460_s2  ;;  %p2465_p0 = scmp.lt.s32.totalorder %s62_s15, %s62_s15 }
  0x3f   :  { %p2466_p1 = scmp.lt.s32.totalorder %s2464_s25, %s2460_s2 }
  0x41   :  { %p2467_p2 = por %p2466_p1, %p2465_p0 }
  0x43   :  { %p2468_p3 = pnand %p2467_p2, %p2461_p13 }
  0x45   :  { %2471 = shalt.err (!%p2468_p3)
}
  0x46   :  { %64 = dma.hbm_to_vmem [thread:$0]  %s3141_s7, 16, %s62_s15, [#allocation6]  }
  0x47   :  { %s2472_s23 = scalar_lea.hbm %s3143_s9, 256 }
  0x48   :  { %p2473_p4 = scmp.ne.s32.totalorder %s3143_s9, %s2472_s23  ;;  %p2476_p5 = scmp.lt.u32.totalorder %s2472_s23, %s3143_s9 }
  0x4a   :  { %p2478_p6 = pnand %p2476_p5, %p2473_p4 }
  0x4c   :  { %2481 = shalt.err (!%p2478_p6)
}
  0x4d   :  { %s2482_s20 = scalar_lea.vmem %s83_s6, 256  ;;  %p2487_p8 = scmp.lt.s32.totalorder %s83_s6, %s83_s6 }
  0x4e   :  { %p2483_p7 = scmp.ne.s32.totalorder %s83_s6, %s2482_s20  ;;  %p2488_p9 = scmp.lt.s32.totalorder %s2482_s20, %s2482_s20 }
  0x50   :  { %p2489_p10 = por %p2488_p9, %p2487_p8 }
  0x52   :  { %p2490_p11 = pnand %p2489_p10, %p2483_p7 }
  0x54   :  { %2493 = shalt.err (!%p2490_p11)
}
  0x55   :  { %88 = dma.hbm_to_vmem [thread:$0]  %s3143_s9, 256, %s83_s6, [#allocation9], %s2549_s18, %s2549_s18, %s2550_s19  }
  0x56   :  { %s2555_s21 = smov [#allocation11]   ;;  %s2494_s2 = scalar_lea.hbm %s3144_s10, 16 }
  0x57   :  { %s95_s22 = sshll.u32 %s2555_s21, 4  ;;  %p2495_p12 = scmp.ne.s32.totalorder %s3144_s10, %s2494_s2  ;;  %s96_s22 = int_to_ptr.vmem [resolvable:$true] %s95_s22 }
  0x58   :  { %p2498_p13 = scmp.lt.u32.totalorder %s2494_s2, %s3144_s10 }
  0x5a   :  { %p2500_p0 = pnand %p2498_p13, %p2495_p12 }
  0x5c   :  { %2503 = shalt.err (!%p2500_p0)
}
  0x5d   :  { %s2504_s8 = scalar_lea.vmem %s96_s22, 16  ;;  %s2508_s9 = scalar_lea.vmem %s96_s22, 32 }
  0x5e   :  { %p2505_p1 = scmp.ne.s32.totalorder %s96_s22, %s2504_s8  ;;  %p2509_p2 = scmp.lt.s32.totalorder %s96_s22, %s96_s22 }
  0x5f   :  { %p2510_p3 = scmp.lt.s32.totalorder %s2508_s9, %s2504_s8 }
  0x61   :  { %p2511_p4 = por %p2510_p3, %p2509_p2 }
  0x63   :  { %p2512_p5 = pnand %p2511_p4, %p2505_p1 }
  0x65   :  { %2515 = shalt.err (!%p2512_p5)
}
  0x66   :  { %98 = dma.hbm_to_vmem [thread:$0]  %s3144_s10, 16, %s96_s22, [#allocation12]  }
  0x67   :  { %2538 = dma.done.wait [#allocation3], 64  }
  0x68   :  { %2539 = vsyncadd [#allocation3], 4294967232 }
  0x69   :  { %2540 = dma.done.wait [#allocation6], 272  }
  0x6a   :  { %2541 = vsyncadd [#allocation6], 4294967024 }
  0x6b   :  { %2542 = dma.done.wait [#allocation9], 384  }
  0x6c   :  { %2543 = vsyncadd [#allocation9], 4294966912 }
  0x6d   :  { %2544 = dma.done.wait [#allocation12], 16  }
  0x6e   :  { %2545 = vsyncadd [#allocation12], 4294967280  ;;  %v2556_v0 = vmov 0.0   ;;  %vm2557_vm0 = vmmov 0   ;;  %v2259_v1 = vld [vmem:[%s3138_s4] sm:$0xff]   ;;  %vm132_vm1 = vcmask 130048   ;;  %v181_v8 = vlaneseq }
  0x6f   :  { %2044 = vmatprep.subr.bf16.mxu0 %v2556_v0  ;;  %2046 = vmatprep.mubr.msk.bf16.mxu0 %vm2557_vm0, %v2556_v0  ;;  %v123_v2 = vld [vmem:[%s3134_s0] sm:$0x1]  ;;  %v2260_v3 = vld [vmem:[#allocation8] sm:$0xff]   ;;  %v2730_v6 = vld [vmem:[#allocation10 + $0x8] sm:$0xff]   ;;  %v2558_v7 = vmov 0   ;;  %s2559_s0 = smov 32  }
  0x70   :  { %2050 = vmatprep.subr.bf16.mxu1 %v2556_v0  ;;  %2052 = vmatprep.mubr.msk.bf16.mxu1 %vm2557_vm0, %v2556_v0  ;;  %v2725_v4 = vld [vmem:[#allocation10] sm:$0xff]   ;;  %v182_v9 = vshrl.u32 %v181_v8, 7  ;;  %v122_v10 = vld [vmem:[#allocation11] sm:$0x1]  ;;  %v2774_v41 = vld [vmem:[%s3145_s11 + $0x10] sm:$0xff]   ;;  %vm260_vm2 = vcmask 261120  }
  0x71   :  { %2045 = vmatpush3.bf16.msra.mxu0 %v2259_v1  ;;  %2051 = vmatpush3.bf16.msra.mxu1 %v2260_v3  ;;  %v177_v5 = vld [vmem:[%s3135_s1] sm:$0xf]  ;;  %v2767_v40 = vld [vmem:[%s3145_s11 + $0x8] sm:$0xff]   ;;  %v2783_v43 = vld [vmem:[%s3145_s11 + $0x18] sm:$0xff]   ;;  %vm360_vm3 = vcmask 523264   ;;  %vm1608_vm4 = vcmask 1040384  }
  0x72   :  { %2056 = vmatprep.subr.bf16.mxu0 %v2556_v0  ;;  %2064 = vmatprep.subr.bf16.mxu1 %v2556_v0  ;;  %v2747_v11 = vsub.s32 0, %v182_v9  ;;  %v2761_v39 = vld [vmem:[%s3145_s11] sm:$0xff]   ;;  %vm1610_vm5 = vcmask 1041408   ;;  %vm1612_vm6 = vcmask 1042432   ;;  %vm1614_vm7 = vcmask 1043456  }
  0x73   :  { %v2811_v51 = vld [vmem:[%s3146_s12] sm:$0x1]  ;;  %vm1616_vm8 = vcmask 1044480   ;;  %vm1618_vm9 = vcmask 1045504   ;;  %vm1620_vm10 = vcmask 1046528   ;;  %vm1685_vm11 = vcmask 64512  }
  0x74   :  { %2047 = vmatmul.mubr.msk.bf16.vlgmr.msra.gmra.mrb[0].mxu0 %vm132_vm1, %v123_v2  ;;  %2053 = vmatmul.mubr.msk.bf16.vlgmr.msra.gmra.mrb[0].mxu1 %vm132_vm1, %v177_v5 }
  0x75   :  { %2057 = vmatpush3.bf16.msra.mxu0 %v2725_v4  ;;  %2060 = vmatprep.mubr.msk.bf16.mxu0 %vm2557_vm0, %v2556_v0 }
  0x76   :  { %2058 = vmatprep.subr.bf16.mxu0 %v2556_v0  ;;  %2072 = vmatprep.mubr.msk.bf16.mxu1 %vm2557_vm0, %v2556_v0 }
  0x77   :  { %2065 = vmatpush3.bf16.msra.mxu1 %v2761_v39 }
  0x78   :  { %2066 = vmatprep.subr.bf16.mxu1 %v2556_v0 }
  0x79   :  { %2059 = vmatpush3.bf16.msra.mxu0 %v2730_v6 }
  0x7a   :  { %2076 = vmatprep.subr.bf16.mxu0 %v2556_v0 }
  0x7b   :  { %2067 = vmatpush3.bf16.msra.mxu1 %v2767_v40 }
  0x7c   :  { %2061 = vmatmul.mubr.bf16.vlgmr.msra.gmra.mrb[4].mxu0 %v2558_v7  ;;  %2068 = vmatprep.subr.bf16.mxu1 %v2556_v0 }
  0x7d   :  { %2077 = vmatpush3.bf16.msra.mxu0 %v2725_v4  ;;  %2080 = vmatprep.mubr.msk.bf16.mxu0 %vm2557_vm0, %v2556_v0 }
  0x7e   :  { %2078 = vmatprep.subr.bf16.mxu0 %v2556_v0 }
  0x7f   :  { %2069 = vmatpush3.bf16.msra.mxu1 %v2774_v41 }
  0x80   :  { %2070 = vmatprep.subr.bf16.mxu1 %v2556_v0 }
  0x81   :  { %2079 = vmatpush3.bf16.msra.mxu0 %v2730_v6 }
  0x82   :  { %2084 = vmatprep.subr.bf16.mxu0 %v2556_v0 }
  0x83   :  { %2071 = vmatpush3.bf16.msra.mxu1 %v2783_v43 }
  0x84   :  { %2096 = vmatprep.subr.bf16.mxu1 %v2556_v0 }
 0x147   :  { %v170_v12 = vpop.f32.mrb[0].mxu0  ;;  %v229_v16 = vpop.f32.mrb[0].mxu1 }
 0x148   :  { %v176_v13 = vadd.f32 %v170_v12, %v122_v10  ;;  %v2048_v14 = vpop.f32.mrb[1].mxu0  ;;  %v2054_v19 = vpop.f32.mrb[1].mxu1 }
 0x149   :  { %v173_v15 = vpop.f32.mrb[2].mxu0  ;;  %v232_v20 = vpop.f32.mrb[2].mxu1 }
 0x14a   :  { %v2049_v17 = vpop.f32.mrb[3].mxu0  ;;  %v184_v18 = vrot.slane %v176_v13, %v2747_v11  ;;  %v2055_v22 = vpop.f32.mrb[3].mxu1 }
 0x14c   :  { %v2750_v21 = vadd.f32 %v229_v16, %v184_v18 }
 0x14f   :  { %v298_v23 = vpop.f32.mrb[4].mxu0 }
 0x150   :  { %v304_v24 = vadd.f32 %v298_v23, %v2750_v21  ;;  %v2062_v25 = vpop.f32.mrb[5].mxu0 }
 0x151   :  { %v301_v26 = vpop.f32.mrb[6].mxu0 }
 0x152   :  { %v1903_v27 = vmul.f32 -1.442695, %v304_v24  ;;  %v2063_v28 = vpop.f32.mrb[7].mxu0 }
 0x154   :  { %2273 = vpow2.f32 %v1903_v27 }
 0x15e   :  { %v2274_v29 = vpop.eup %2273 }
 0x15f   :  { %v308_v30 = vadd.f32 1.0, %v2274_v29 }
 0x161   :  { %2275 = vrcp.f32 %v308_v30 }
 0x16b   :  { %v2276_v31 = vpop.eup %2275 }
 0x16c   :  { %v311_v32 = vmul.f32 2.0, %v2276_v31  ;;  %v313_v36 = vmul.f32 0.0, %v2276_v31 }
 0x16e   :  { %v1904_v33 = vadd.f32 -1.0, %v311_v32 }
 0x170   :  { %315 = vrot.lane.b32.xlu0 %v1904_v33, %s2549_s18 }
 0x1e2   :  { %v316_v34 = vpop.permute.xlu0 %315 }
 0x1e3   :  { %v318_v35 = vmul.f32 %v2276_v31, %v316_v34 }
 0x1e5   :  { %320 = vrot.lane.b32.xlu0 %v318_v35, %s2559_s0 }
 0x257   :  { %v321_v37 = vpop.permute.xlu0 %320 }
 0x258   :  { %v2755_v38 = vadd.f32 %v321_v37, %v313_v36 }
 0x25a   :  { %2277 = vtanh.f32 %v2755_v38  ;;  %v490_v19 = vrot.slane %v2755_v38, 7 }
 0x264   :  { %v2278_v42 = vpop.eup %2277 }
 0x265   :  { %326 = vrot.lane.b32.xlu1 %v2278_v42, %s2549_s18 }
 0x2d7   :  { %v327_v44 = vpop.permute.xlu1 %326 }
 0x2d8   :  { %v329_v45 = vmul.f32 %v2276_v31, %v327_v44 }
 0x2da   :  { %v430_v46 = vpack.c.bf16 %v329_v45, %v329_v45  ;;  %331 = vrot.lane.b32.xlu1 %v329_v45, %s2559_s0 }
 0x2dc   :  { %432 = vrot.lane.b32.xlu0 %v430_v46, %s2559_s0 }
 0x34c   :  { %v332_v47 = vpop.permute.xlu1 %331 }
 0x34d   :  { %v334_v48 = vsel %vm260_vm2, %v332_v47, 0.0 }
 0x34e   :  { %v335_v49 = vpack.c.bf16 %v334_v48, %v334_v48  ;;  %v433_v50 = vpop.permute.xlu0 %432 }
 0x34f   :  { %2081 = vmatmul.mubr.msk.bf16.vlgmr.msra.gmra.mrb[8].mxu0 %vm260_vm2, %v433_v50 }
 0x350   :  { %2073 = vmatmul.mubr.msk.bf16.vlgmr.msra.gmra.mrb[4].mxu1 %vm360_vm3, %v335_v49  ;;  %2085 = vmatpush3.bf16.msra.mxu0 %v2761_v39 }
 0x351   :  { %2086 = vmatprep.subr.bf16.mxu0 %v2556_v0  ;;  %2097 = vmatpush3.bf16.msra.mxu1 %v2725_v4 }
 0x352   :  { %2098 = vmatprep.subr.bf16.mxu1 %v2556_v0  ;;  %2100 = vmatprep.mubr.msk.bf16.mxu1 %vm2557_vm0, %v2556_v0 }
 0x353   :  { %2092 = vmatprep.mubr.msk.bf16.mxu0 %vm2557_vm0, %v2556_v0 }
 0x354   :  { %2087 = vmatpush3.bf16.msra.mxu0 %v2767_v40 }
 0x355   :  { %2088 = vmatprep.subr.bf16.mxu0 %v2556_v0  ;;  %2099 = vmatpush3.bf16.msra.mxu1 %v2730_v6 }
 0x356   :  { %2104 = vmatprep.subr.bf16.mxu1 %v2556_v0 }
 0x358   :  { %2089 = vmatpush3.bf16.msra.mxu0 %v2774_v41 }
 0x359   :  { %2090 = vmatprep.subr.bf16.mxu0 %v2556_v0 }
 0x35c   :  { %2091 = vmatpush3.bf16.msra.mxu0 %v2783_v43 }
 0x35d   :  { %2116 = vmatprep.subr.bf16.mxu0 %v2556_v0 }
 0x422   :  { %v471_v52 = vpop.f32.mrb[8].mxu0 }
 0x423   :  { %v478_v53 = vrot.slane %v471_v52, 7  ;;  %v398_v54 = vpop.f32.mrb[4].mxu1  ;;  %v2082_v55 = vpop.f32.mrb[9].mxu0 }
 0x424   :  { %v404_v56 = vadd.f32 %v398_v54, %v2811_v51  ;;  %v2074_v57 = vpop.f32.mrb[5].mxu1  ;;  %v474_v58 = vpop.f32.mrb[10].mxu0 }
 0x425   :  { %v480_v59 = vadd.f32 %v478_v53, %v2750_v21  ;;  %v401_v60 = vpop.f32.mrb[6].mxu1  ;;  %v2083_v61 = vpop.f32.mrb[11].mxu0 }
 0x426   :  { %v1910_v62 = vmul.f32 -1.442695, %v404_v56  ;;  %v2075_v63 = vpop.f32.mrb[7].mxu1 }
 0x427   :  { %v1913_v1 = vmul.f32 -1.442695, %v480_v59 }
 0x428   :  { %2279 = vpow2.f32 %v1910_v62 }
 0x429   :  { %2281 = vpow2.f32 %v1913_v1 }
 0x432   :  { %v2280_v2 = vpop.eup %2279 }
 0x433   :  { %v2282_v3 = vpop.eup %2281  ;;  %v408_v5 = vadd.f32 1.0, %v2280_v2 }
 0x434   :  { %v484_v7 = vadd.f32 1.0, %v2282_v3 }
 0x435   :  { %2283 = vrcp.f32 %v408_v5 }
 0x436   :  { %2285 = vrcp.f32 %v484_v7 }
 0x43f   :  { %v2284_v8 = vpop.eup %2283 }
 0x440   :  { %v2286_v9 = vpop.eup %2285  ;;  %v411_v10 = vmul.f32 2.0, %v2284_v8  ;;  %v413_v20 = vmul.f32 0.0, %v2284_v8 }
 0x441   :  { %v487_v12 = vmul.f32 2.0, %v2286_v9  ;;  %v492_v23 = vmul.f32 %v2286_v9, %v490_v19 }
 0x442   :  { %v1911_v13 = vadd.f32 -1.0, %v411_v10 }
 0x443   :  { %v1914_v14 = vadd.f32 -1.0, %v487_v12 }
 0x444   :  { %415 = vrot.lane.b32.xlu1 %v1911_v13, %s2549_s18 }
 0x445   :  { %494 = vrot.lane.b32.xlu0 %v1914_v14, %s2549_s18 }
 0x4b6   :  { %v416_v15 = vpop.permute.xlu1 %415 }
 0x4b7   :  { %v418_v16 = vmul.f32 %v2284_v8, %v416_v15  ;;  %v495_v17 = vpop.permute.xlu0 %494 }
 0x4b8   :  { %v497_v18 = vmul.f32 %v2286_v9, %v495_v17 }
 0x4b9   :  { %420 = vrot.lane.b32.xlu1 %v418_v16, %s2559_s0 }
 0x4ba   :  { %499 = vrot.lane.b32.xlu0 %v497_v18, %s2559_s0 }
 0x52b   :  { %v421_v22 = vpop.permute.xlu1 %420 }
 0x52c   :  { %v2820_v24 = vadd.f32 %v421_v22, %v413_v20  ;;  %v500_v25 = vpop.permute.xlu0 %499 }
 0x52d   :  { %v2822_v26 = vadd.f32 %v500_v25, %v492_v23 }
 0x52e   :  { %2287 = vtanh.f32 %v2820_v24 }
 0x52f   :  { %2289 = vtanh.f32 %v2822_v26  ;;  %v657_v14 = vrot.slane %v2822_v26, 7 }
 0x538   :  { %v2288_v27 = vpop.eup %2287 }
 0x539   :  { %v2290_v28 = vpop.eup %2289  ;;  %426 = vrot.lane.b32.xlu1 %v2288_v27, %s2549_s18 }
 0x53a   :  { %505 = vrot.lane.b32.xlu0 %v2290_v28, %s2549_s18 }
 0x5ab   :  { %v427_v29 = vpop.permute.xlu1 %426 }
 0x5ac   :  { %v2828_v30 = vmul.f32 %v2284_v8, %v427_v29  ;;  %v506_v31 = vpop.permute.xlu0 %505 }
 0x5ad   :  { %v508_v32 = vmul.f32 %v2286_v9, %v506_v31 }
 0x5ae   :  { %v517_v33 = vrot.slane %v2828_v30, %v2747_v11 }
 0x5af   :  { %v595_v34 = vpack.c.bf16 %v508_v32, %v508_v32  ;;  %510 = vrot.lane.b32.xlu1 %v508_v32, %s2559_s0 }
 0x5b0   :  { %518 = vrot.lane.b32.xlu0 %v517_v33, %s2549_s18 }
 0x5b1   :  { %v597_v35 = vshrl.u32 %v595_v34, 16 }
 0x5b3   :  { %599 = vrot.lane.b32.xlu1 %v597_v35, %s2559_s0 }
 0x621   :  { %v511_v36 = vpop.permute.xlu1 %510 }
 0x622   :  { %v519_v37 = vpop.permute.xlu0 %518 }
 0x623   :  { %v521_v38 = vsel %vm260_vm2, %v511_v36, %v519_v37 }
 0x624   :  { %v522_v42 = vpack.c.bf16 %v521_v38, %v521_v38 }
 0x625   :  { %v600_v44 = vpop.permute.xlu1 %599 }
 0x626   :  { %v524_v45 = vshrl.u32 %v522_v42, 16  ;;  %2101 = vmatmul.mubr.msk.bf16.vlgmr.msra.gmra.mrb[8].mxu1 %vm260_vm2, %v600_v44 }
 0x627   :  { %2105 = vmatpush3.bf16.msra.mxu1 %v2761_v39  ;;  %2112 = vmatprep.mubr.msk.bf16.mxu1 %vm2557_vm0, %v2556_v0 }
 0x628   :  { %2093 = vmatmul.mubr.msk.bf16.vlgmr.msra.gmra.mrb[12].mxu0 %vm360_vm3, %v524_v45  ;;  %2106 = vmatprep.subr.bf16.mxu1 %v2556_v0 }
 0x629   :  { %2117 = vmatpush3.bf16.msra.mxu0 %v2725_v4  ;;  %2120 = vmatprep.mubr.msk.bf16.mxu0 %vm2557_vm0, %v2556_v0 }
 0x62a   :  { %2118 = vmatprep.subr.bf16.mxu0 %v2556_v0 }
 0x62b   :  { %2107 = vmatpush3.bf16.msra.mxu1 %v2767_v40 }
 0x62c   :  { %2108 = vmatprep.subr.bf16.mxu1 %v2556_v0 }
 0x62d   :  { %2119 = vmatpush3.bf16.msra.mxu0 %v2730_v6 }
 0x62e   :  { %2124 = vmatprep.subr.bf16.mxu0 %v2556_v0 }
 0x62f   :  { %2109 = vmatpush3.bf16.msra.mxu1 %v2774_v41 }
 0x630   :  { %2110 = vmatprep.subr.bf16.mxu1 %v2556_v0 }
 0x633   :  { %2111 = vmatpush3.bf16.msra.mxu1 %v2783_v43 }
 0x634   :  { %2136 = vmatprep.subr.bf16.mxu1 %v2556_v0 }
 0x6f9   :  { %v638_v46 = vpop.f32.mrb[8].mxu1 }
 0x6fa   :  { %v645_v47 = vrot.slane %v638_v46, 6  ;;  %v2102_v48 = vpop.f32.mrb[9].mxu1 }
 0x6fb   :  { %v563_v49 = vpop.f32.mrb[12].mxu0  ;;  %v641_v50 = vpop.f32.mrb[10].mxu1 }
 0x6fc   :  { %v647_v52 = vadd.f32 %v645_v47, %v2750_v21  ;;  %v569_v53 = vadd.f32 %v563_v49, %v2811_v51  ;;  %v2094_v54 = vpop.f32.mrb[13].mxu0  ;;  %v2103_v55 = vpop.f32.mrb[11].mxu1 }
 0x6fd   :  { %v566_v56 = vpop.f32.mrb[14].mxu0 }
 0x6fe   :  { %v1919_v57 = vmul.f32 -1.442695, %v647_v52  ;;  %v1916_v58 = vmul.f32 -1.442695, %v569_v53  ;;  %v2095_v59 = vpop.f32.mrb[15].mxu0 }
 0x700   :  { %2291 = vpow2.f32 %v1919_v57 }
 0x701   :  { %2293 = vpow2.f32 %v1916_v58 }
 0x70a   :  { %v2292_v60 = vpop.eup %2291 }
 0x70b   :  { %v2294_v61 = vpop.eup %2293  ;;  %v651_v62 = vadd.f32 1.0, %v2292_v60 }
 0x70c   :  { %v573_v63 = vadd.f32 1.0, %v2294_v61 }
 0x70d   :  { %2295 = vrcp.f32 %v651_v62 }
 0x70e   :  { %2297 = vrcp.f32 %v573_v63 }
 0x717   :  { %v2296_v1 = vpop.eup %2295 }
 0x718   :  { %v2298_v2 = vpop.eup %2297  ;;  %v654_v3 = vmul.f32 2.0, %v2296_v1  ;;  %v659_v15 = vmul.f32 %v2296_v1, %v657_v14 }
 0x719   :  { %v576_v5 = vmul.f32 2.0, %v2298_v2  ;;  %v578_v17 = vmul.f32 %v2298_v2, %v2820_v24 }
 0x71a   :  { %v1920_v7 = vadd.f32 -1.0, %v654_v3 }
 0x71b   :  { %v1917_v8 = vadd.f32 -1.0, %v576_v5 }
 0x71c   :  { %661 = vrot.lane.b32.xlu1 %v1920_v7, %s2549_s18 }
 0x71d   :  { %580 = vrot.lane.b32.xlu0 %v1917_v8, %s2549_s18 }
 0x78e   :  { %v662_v9 = vpop.permute.xlu1 %661 }
 0x78f   :  { %v664_v10 = vmul.f32 %v2296_v1, %v662_v9  ;;  %v581_v12 = vpop.permute.xlu0 %580 }
 0x790   :  { %v583_v13 = vmul.f32 %v2298_v2, %v581_v12 }
 0x791   :  { %666 = vrot.lane.b32.xlu1 %v664_v10, %s2559_s0 }
 0x792   :  { %585 = vrot.lane.b32.xlu0 %v583_v13, %s2559_s0 }
 0x803   :  { %v667_v16 = vpop.permute.xlu1 %666 }
 0x804   :  { %v2862_v18 = vadd.f32 %v667_v16, %v659_v15  ;;  %v586_v19 = vpop.permute.xlu0 %585 }
 0x805   :  { %v2864_v20 = vadd.f32 %v586_v19, %v578_v17 }
 0x806   :  { %2299 = vtanh.f32 %v2862_v18  ;;  %v822_v9 = vrot.slane %v2862_v18, 7 }
 0x807   :  { %2301 = vtanh.f32 %v2864_v20 }
 0x810   :  { %v2300_v22 = vpop.eup %2299 }
 0x811   :  { %v2302_v23 = vpop.eup %2301  ;;  %672 = vrot.lane.b32.xlu1 %v2300_v22, %s2549_s18 }
 0x812   :  { %591 = vrot.lane.b32.xlu0 %v2302_v23, %s2549_s18 }
 0x883   :  { %v673_v25 = vpop.permute.xlu1 %672 }
 0x884   :  { %v675_v26 = vmul.f32 %v2296_v1, %v673_v25  ;;  %v592_v27 = vpop.permute.xlu0 %591 }
 0x885   :  { %v594_v28 = vmul.f32 %v2298_v2, %v592_v27 }
 0x886   :  { %v761_v24 = vpack.c.bf16 %v675_v26, %v675_v26  ;;  %677 = vrot.lane.b32.xlu0 %v675_v26, %s2559_s0 }
 0x887   :  { %v2872_v29 = vrot.slane %v594_v28, %v2747_v11 }
 0x888   :  { %v763_v31 = vrot.slane %v761_v24, 1 }
 0x889   :  { %685 = vrot.lane.b32.xlu1 %v2872_v29, %s2549_s18  ;;  %v1609_v28 = vsel %vm1608_vm4, %v2828_v30, %v2872_v29 }
 0x88a   :  { %764 = vrot.lane.b32.xlu0 %v763_v31, %s2559_s0 }
 0x8f8   :  { %v678_v32 = vpop.permute.xlu0 %677 }
 0x8fb   :  { %v686_v33 = vpop.permute.xlu1 %685 }
 0x8fc   :  { %v688_v34 = vsel %vm260_vm2, %v678_v32, %v686_v33  ;;  %v765_v35 = vpop.permute.xlu0 %764 }
 0x8fd   :  { %v689_v36 = vpack.c.bf16 %v688_v34, %v688_v34  ;;  %2121 = vmatmul.mubr.msk.bf16.vlgmr.msra.gmra.mrb[16].mxu0 %vm260_vm2, %v765_v35 }
 0x8fe   :  { %2125 = vmatpush3.bf16.msra.mxu0 %v2761_v39  ;;  %2132 = vmatprep.mubr.msk.bf16.mxu0 %vm2557_vm0, %v2556_v0 }
 0x8ff   :  { %v691_v37 = vrot.slane %v689_v36, 1  ;;  %2126 = vmatprep.subr.bf16.mxu0 %v2556_v0 }
 0x901   :  { %2113 = vmatmul.mubr.msk.bf16.vlgmr.msra.gmra.mrb[12].mxu1 %vm360_vm3, %v691_v37 }
 0x902   :  { %2127 = vmatpush3.bf16.msra.mxu0 %v2767_v40  ;;  %2137 = vmatpush3.bf16.msra.mxu1 %v2725_v4 }
 0x903   :  { %2128 = vmatprep.subr.bf16.mxu0 %v2556_v0  ;;  %2138 = vmatprep.subr.bf16.mxu1 %v2556_v0 }
 0x904   :  { %2140 = vmatprep.mubr.msk.bf16.mxu1 %vm2557_vm0, %v2556_v0 }
 0x906   :  { %2129 = vmatpush3.bf16.msra.mxu0 %v2774_v41  ;;  %2139 = vmatpush3.bf16.msra.mxu1 %v2730_v6 }
 0x907   :  { %2130 = vmatprep.subr.bf16.mxu0 %v2556_v0  ;;  %2144 = vmatprep.subr.bf16.mxu1 %v2556_v0 }
 0x90a   :  { %2131 = vmatpush3.bf16.msra.mxu0 %v2783_v43 }
 0x90b   :  { %2156 = vmatprep.subr.bf16.mxu0 %v2556_v0 }
 0x9d0   :  { %v803_v38 = vpop.f32.mrb[16].mxu0 }
 0x9d1   :  { %v810_v42 = vrot.slane %v803_v38, 5  ;;  %v2122_v44 = vpop.f32.mrb[17].mxu0 }
 0x9d2   :  { %v806_v45 = vpop.f32.mrb[18].mxu0 }
 0x9d3   :  { %v812_v46 = vadd.f32 %v810_v42, %v2750_v21  ;;  %v2123_v47 = vpop.f32.mrb[19].mxu0 }
 0x9d4   :  { %v729_v48 = vpop.f32.mrb[12].mxu1 }
 0x9d5   :  { %v1925_v49 = vmul.f32 -1.442695, %v812_v46  ;;  %v735_v50 = vadd.f32 %v729_v48, %v2811_v51  ;;  %v2114_v52 = vpop.f32.mrb[13].mxu1 }
 0x9d6   :  { %v732_v53 = vpop.f32.mrb[14].mxu1 }
 0x9d7   :  { %2303 = vpow2.f32 %v1925_v49  ;;  %v1922_v54 = vmul.f32 -1.442695, %v735_v50  ;;  %v2115_v55 = vpop.f32.mrb[15].mxu1 }
 0x9d9   :  { %2305 = vpow2.f32 %v1922_v54 }
 0x9e1   :  { %v2304_v56 = vpop.eup %2303 }
 0x9e2   :  { %v816_v57 = vadd.f32 1.0, %v2304_v56 }
 0x9e3   :  { %v2306_v58 = vpop.eup %2305 }
 0x9e4   :  { %2307 = vrcp.f32 %v816_v57  ;;  %v739_v59 = vadd.f32 1.0, %v2306_v58 }
 0x9e6   :  { %2309 = vrcp.f32 %v739_v59 }
 0x9ee   :  { %v2308_v60 = vpop.eup %2307 }
 0x9ef   :  { %v819_v61 = vmul.f32 2.0, %v2308_v60  ;;  %v824_v10 = vmul.f32 %v2308_v60, %v822_v9 }
 0x9f0   :  { %v2310_v62 = vpop.eup %2309 }
 0x9f1   :  { %v1926_v63 = vadd.f32 -1.0, %v819_v61  ;;  %v742_v1 = vmul.f32 2.0, %v2310_v62  ;;  %v744_v14 = vmul.f32 %v2310_v62, %v2864_v20 }
 0x9f3   :  { %826 = vrot.lane.b32.xlu0 %v1926_v63, %s2549_s18  ;;  %v1923_v2 = vadd.f32 -1.0, %v742_v1 }
 0x9f5   :  { %746 = vrot.lane.b32.xlu1 %v1923_v2, %s2549_s18 }
 0xa65   :  { %v827_v3 = vpop.permute.xlu0 %826 }
 0xa66   :  { %v829_v5 = vmul.f32 %v2308_v60, %v827_v3 }
 0xa67   :  { %v747_v7 = vpop.permute.xlu1 %746 }
 0xa68   :  { %v749_v8 = vmul.f32 %v2310_v62, %v747_v7  ;;  %831 = vrot.lane.b32.xlu0 %v829_v5, %s2559_s0 }
 0xa6a   :  { %751 = vrot.lane.b32.xlu1 %v749_v8, %s2559_s0 }
 0xada   :  { %v832_v12 = vpop.permute.xlu0 %831 }
 0xadb   :  { %v2903_v13 = vadd.f32 %v832_v12, %v824_v10 }
 0xadc   :  { %v752_v15 = vpop.permute.xlu1 %751 }
 0xadd   :  { %2311 = vtanh.f32 %v2903_v13  ;;  %v2907_v16 = vadd.f32 %v752_v15, %v744_v14  ;;  %v991_v8 = vrot.slane %v2903_v13, 7 }
 0xadf   :  { %2313 = vtanh.f32 %v2907_v16 }
 0xae7   :  { %v2312_v17 = vpop.eup %2311 }
 0xae8   :  { %837 = vrot.lane.b32.xlu0 %v2312_v17, %s2549_s18 }
 0xae9   :  { %v2314_v19 = vpop.eup %2313 }
 0xaea   :  { %757 = vrot.lane.b32.xlu1 %v2314_v19, %s2549_s18 }
 0xb5a   :  { %v838_v18 = vpop.permute.xlu0 %837 }
 0xb5b   :  { %v840_v22 = vmul.f32 %v2308_v60, %v838_v18 }
 0xb5c   :  { %v758_v23 = vpop.permute.xlu1 %757 }
 0xb5d   :  { %v928_v25 = vpack.c.bf16 %v840_v22, %v840_v22  ;;  %v760_v26 = vmul.f32 %v2310_v62, %v758_v23  ;;  %842 = vrot.lane.b32.xlu1 %v840_v22, %s2559_s0 }
 0xb5f   :  { %v930_v20 = vshrl.u32 %v928_v25, 16  ;;  %v849_v27 = vrot.slane %v760_v26, %v2747_v11 }
 0xb61   :  { %v932_v24 = vrot.slane %v930_v20, 1  ;;  %v2916_v31 = vsel %vm1610_vm5, %v1609_v28, %v849_v27  ;;  %850 = vrot.lane.b32.xlu0 %v849_v27, %s2549_s18 }
 0xb63   :  { %933 = vrot.lane.b32.xlu1 %v932_v24, %s2559_s0 }
 0xbcf   :  { %v843_v32 = vpop.permute.xlu1 %842 }
 0xbd3   :  { %v851_v33 = vpop.permute.xlu0 %850 }
 0xbd4   :  { %v853_v34 = vsel %vm260_vm2, %v843_v32, %v851_v33 }
 0xbd5   :  { %v854_v35 = vpack.c.bf16 %v853_v34, %v853_v34  ;;  %v934_v36 = vpop.permute.xlu1 %933 }
 0xbd6   :  { %2141 = vmatmul.mubr.msk.bf16.vlgmr.msra.gmra.mrb[16].mxu1 %vm260_vm2, %v934_v36 }
 0xbd7   :  { %v856_v37 = vshrl.u32 %v854_v35, 16  ;;  %2145 = vmatpush3.bf16.msra.mxu1 %v2761_v39  ;;  %2152 = vmatprep.mubr.msk.bf16.mxu1 %vm2557_vm0, %v2556_v0 }
 0xbd8   :  { %2146 = vmatprep.subr.bf16.mxu1 %v2556_v0 }
 0xbd9   :  { %v858_v30 = vrot.slane %v856_v37, 1 }
 0xbdb   :  { %2133 = vmatmul.mubr.msk.bf16.vlgmr.msra.gmra.mrb[20].mxu0 %vm360_vm3, %v858_v30  ;;  %2147 = vmatpush3.bf16.msra.mxu1 %v2767_v40 }
 0xbdc   :  { %2157 = vmatpush3.bf16.msra.mxu0 %v2725_v4  ;;  %2148 = vmatprep.subr.bf16.mxu1 %v2556_v0 }
 0xbdd   :  { %2158 = vmatprep.subr.bf16.mxu0 %v2556_v0  ;;  %2160 = vmatprep.mubr.msk.bf16.mxu0 %vm2557_vm0, %v2556_v0 }
 0xbdf   :  { %2149 = vmatpush3.bf16.msra.mxu1 %v2774_v41 }
 0xbe0   :  { %2159 = vmatpush3.bf16.msra.mxu0 %v2730_v6  ;;  %2150 = vmatprep.subr.bf16.mxu1 %v2556_v0 }
 0xbe1   :  { %2164 = vmatprep.subr.bf16.mxu0 %v2556_v0 }
 0xbe3   :  { %2151 = vmatpush3.bf16.msra.mxu1 %v2783_v43 }
 0xbe4   :  { %2176 = vmatprep.subr.bf16.mxu1 %v2556_v0 }
 0xca9   :  { %v972_v29 = vpop.f32.mrb[16].mxu1 }
 0xcaa   :  { %v979_v38 = vrot.slane %v972_v29, 4  ;;  %v2142_v42 = vpop.f32.mrb[17].mxu1 }
 0xcab   :  { %v975_v44 = vpop.f32.mrb[18].mxu1 }
 0xcac   :  { %v981_v45 = vadd.f32 %v979_v38, %v2750_v21  ;;  %v2143_v46 = vpop.f32.mrb[19].mxu1 }
 0xcae   :  { %v1931_v47 = vmul.f32 -1.442695, %v981_v45  ;;  %v896_v48 = vpop.f32.mrb[20].mxu0 }
 0xcaf   :  { %v902_v49 = vadd.f32 %v896_v48, %v2811_v51  ;;  %v2134_v50 = vpop.f32.mrb[21].mxu0 }
 0xcb0   :  { %2315 = vpow2.f32 %v1931_v47  ;;  %v899_v52 = vpop.f32.mrb[22].mxu0 }
 0xcb1   :  { %v1928_v53 = vmul.f32 -1.442695, %v902_v49  ;;  %v2135_v54 = vpop.f32.mrb[23].mxu0 }
 0xcb3   :  { %2317 = vpow2.f32 %v1928_v53 }
 0xcba   :  { %v2316_v55 = vpop.eup %2315 }
 0xcbb   :  { %v985_v56 = vadd.f32 1.0, %v2316_v55 }
 0xcbd   :  { %v2318_v57 = vpop.eup %2317  ;;  %2319 = vrcp.f32 %v985_v56 }
 0xcbe   :  { %v906_v58 = vadd.f32 1.0, %v2318_v57 }
 0xcc0   :  { %2321 = vrcp.f32 %v906_v58 }
 0xcc7   :  { %v2320_v59 = vpop.eup %2319 }
 0xcc8   :  { %v988_v60 = vmul.f32 2.0, %v2320_v59  ;;  %v993_v9 = vmul.f32 %v2320_v59, %v991_v8 }
 0xcca   :  { %v2322_v61 = vpop.eup %2321  ;;  %v1932_v62 = vadd.f32 -1.0, %v988_v60 }
 0xccb   :  { %v909_v63 = vmul.f32 2.0, %v2322_v61  ;;  %v911_v14 = vmul.f32 %v2322_v61, %v2907_v16 }
 0xccc   :  { %995 = vrot.lane.b32.xlu1 %v1932_v62, %s2549_s18 }
 0xccd   :  { %v1929_v1 = vadd.f32 -1.0, %v909_v63 }
 0xccf   :  { %913 = vrot.lane.b32.xlu0 %v1929_v1, %s2549_s18 }
 0xd3e   :  { %v996_v2 = vpop.permute.xlu1 %995 }
 0xd3f   :  { %v998_v3 = vmul.f32 %v2320_v59, %v996_v2 }
 0xd41   :  { %v914_v5 = vpop.permute.xlu0 %913  ;;  %1000 = vrot.lane.b32.xlu1 %v998_v3, %s2559_s0 }
 0xd42   :  { %v916_v7 = vmul.f32 %v2322_v61, %v914_v5 }
 0xd44   :  { %918 = vrot.lane.b32.xlu0 %v916_v7, %s2559_s0 }
 0xdb3   :  { %v1001_v10 = vpop.permute.xlu1 %1000 }
 0xdb4   :  { %v2946_v12 = vadd.f32 %v1001_v10, %v993_v9 }
 0xdb6   :  { %2323 = vtanh.f32 %v2946_v12  ;;  %v919_v15 = vpop.permute.xlu0 %918  ;;  %v1156_v63 = vrot.slane %v2946_v12, 7 }
 0xdb7   :  { %v2950_v17 = vadd.f32 %v919_v15, %v911_v14 }
 0xdb9   :  { %2325 = vtanh.f32 %v2950_v17 }
 0xdc0   :  { %v2324_v19 = vpop.eup %2323 }
 0xdc1   :  { %1006 = vrot.lane.b32.xlu1 %v2324_v19, %s2549_s18 }
 0xdc3   :  { %v2326_v18 = vpop.eup %2325 }
 0xdc4   :  { %924 = vrot.lane.b32.xlu0 %v2326_v18, %s2549_s18 }
 0xe33   :  { %v1007_v13 = vpop.permute.xlu1 %1006 }
 0xe34   :  { %v1009_v22 = vmul.f32 %v2320_v59, %v1007_v13 }
 0xe36   :  { %v1095_v23 = vpack.c.bf16 %v1009_v22, %v1009_v22  ;;  %v925_v25 = vpop.permute.xlu0 %924  ;;  %1011 = vrot.lane.b32.xlu0 %v1009_v22, %s2559_s0 }
 0xe37   :  { %v927_v16 = vmul.f32 %v2322_v61, %v925_v25 }
 0xe38   :  { %v1097_v26 = vrot.slane %v1095_v23, 2 }
 0xe39   :  { %v1018_v20 = vrot.slane %v927_v16, %v2747_v11 }
 0xe3a   :  { %1098 = vrot.lane.b32.xlu0 %v1097_v26, %s2559_s0 }
 0xe3b   :  { %1019 = vrot.lane.b32.xlu1 %v1018_v20, %s2549_s18  ;;  %v2960_v27 = vsel %vm1612_vm6, %v2916_v31, %v1018_v20 }
 0xea8   :  { %v1012_v28 = vpop.permute.xlu0 %1011 }
 0xeac   :  { %v1099_v24 = vpop.permute.xlu0 %1098 }
 0xead   :  { %v1020_v32 = vpop.permute.xlu1 %1019  ;;  %2161 = vmatmul.mubr.msk.bf16.vlgmr.msra.gmra.mrb[24].mxu0 %vm260_vm2, %v1099_v24 }
 0xeae   :  { %v1022_v33 = vsel %vm260_vm2, %v1012_v28, %v1020_v32  ;;  %2165 = vmatpush3.bf16.msra.mxu0 %v2761_v39  ;;  %2172 = vmatprep.mubr.msk.bf16.mxu0 %vm2557_vm0, %v2556_v0  ;;  %v2377_v32 = vld [vmem:[#allocation10] sm:$0xff]  }
 0xeaf   :  { %v1023_v34 = vpack.c.bf16 %v1022_v33, %v1022_v33  ;;  %2166 = vmatprep.subr.bf16.mxu0 %v2556_v0 }
 0xeb1   :  { %v1025_v35 = vrot.slane %v1023_v34, 2 }
 0xeb2   :  { %2167 = vmatpush3.bf16.msra.mxu0 %v2767_v40 }
 0xeb3   :  { %2153 = vmatmul.mubr.msk.bf16.vlgmr.msra.gmra.mrb[20].mxu1 %vm360_vm3, %v1025_v35  ;;  %2168 = vmatprep.subr.bf16.mxu0 %v2556_v0 }
 0xeb4   :  { %2177 = vmatpush3.bf16.msra.mxu1 %v2725_v4  ;;  %2180 = vmatprep.mubr.msk.bf16.mxu1 %vm2557_vm0, %v2556_v0 }
 0xeb5   :  { %2178 = vmatprep.subr.bf16.mxu1 %v2556_v0 }
 0xeb6   :  { %2169 = vmatpush3.bf16.msra.mxu0 %v2774_v41 }
 0xeb7   :  { %2170 = vmatprep.subr.bf16.mxu0 %v2556_v0 }
 0xeb8   :  { %2179 = vmatpush3.bf16.msra.mxu1 %v2730_v6 }
 0xeb9   :  { %2184 = vmatprep.subr.bf16.mxu1 %v2556_v0 }
 0xeba   :  { %2171 = vmatpush3.bf16.msra.mxu0 %v2783_v43 }
 0xebb   :  { %2196 = vmatprep.subr.bf16.mxu0 %v2556_v0 }
 0xf80   :  { %v1137_v31 = vpop.f32.mrb[24].mxu0 }
 0xf81   :  { %v1144_v36 = vrot.slane %v1137_v31, 3  ;;  %v2162_v4 = vpop.f32.mrb[25].mxu0 }
 0xf82   :  { %v1140_v37 = vpop.f32.mrb[26].mxu0 }
 0xf83   :  { %v1146_v30 = vadd.f32 %v1144_v36, %v2750_v21  ;;  %v2163_v29 = vpop.f32.mrb[27].mxu0 }
 0xf85   :  { %v1937_v38 = vmul.f32 -1.442695, %v1146_v30 }
 0xf86   :  { %v1063_v42 = vpop.f32.mrb[20].mxu1 }
 0xf87   :  { %2327 = vpow2.f32 %v1937_v38  ;;  %v1069_v44 = vadd.f32 %v1063_v42, %v2811_v51  ;;  %v2154_v45 = vpop.f32.mrb[21].mxu1 }
 0xf88   :  { %v1066_v6 = vpop.f32.mrb[22].mxu1 }
 0xf89   :  { %v1934_v46 = vmul.f32 -1.442695, %v1069_v44  ;;  %v2155_v47 = vpop.f32.mrb[23].mxu1 }
 0xf8b   :  { %2329 = vpow2.f32 %v1934_v46 }
 0xf91   :  { %v2328_v48 = vpop.eup %2327 }
 0xf92   :  { %v1150_v49 = vadd.f32 1.0, %v2328_v48 }
 0xf94   :  { %2331 = vrcp.f32 %v1150_v49 }
 0xf95   :  { %v2330_v50 = vpop.eup %2329 }
 0xf96   :  { %v1073_v52 = vadd.f32 1.0, %v2330_v50 }
 0xf98   :  { %2333 = vrcp.f32 %v1073_v52 }
 0xf9e   :  { %v2332_v53 = vpop.eup %2331 }
 0xf9f   :  { %v1153_v54 = vmul.f32 2.0, %v2332_v53  ;;  %v1158_v1 = vmul.f32 %v2332_v53, %v1156_v63 }
 0xfa1   :  { %v1938_v55 = vadd.f32 -1.0, %v1153_v54 }
 0xfa2   :  { %v2334_v56 = vpop.eup %2333 }
 0xfa3   :  { %1160 = vrot.lane.b32.xlu0 %v1938_v55, %s2549_s18  ;;  %v1076_v57 = vmul.f32 2.0, %v2334_v56  ;;  %v1078_v5 = vmul.f32 %v2334_v56, %v2950_v17 }
 0xfa5   :  { %v1935_v58 = vadd.f32 -1.0, %v1076_v57 }
 0xfa7   :  { %1080 = vrot.lane.b32.xlu1 %v1935_v58, %s2549_s18 }
0x1015   :  { %v1161_v59 = vpop.permute.xlu0 %1160 }
0x1016   :  { %v1163_v60 = vmul.f32 %v2332_v53, %v1161_v59 }
0x1018   :  { %1165 = vrot.lane.b32.xlu0 %v1163_v60, %s2559_s0 }
0x1019   :  { %v1081_v61 = vpop.permute.xlu1 %1080 }
0x101a   :  { %v1083_v62 = vmul.f32 %v2334_v56, %v1081_v61 }
0x101c   :  { %1085 = vrot.lane.b32.xlu1 %v1083_v62, %s2559_s0 }
0x108a   :  { %v1166_v2 = vpop.permute.xlu0 %1165 }
0x108b   :  { %v2988_v3 = vadd.f32 %v1166_v2, %v1158_v1 }
0x108d   :  { %2335 = vtanh.f32 %v2988_v3  ;;  %v1325_v57 = vrot.slane %v2988_v3, 7 }
0x108e   :  { %v1086_v7 = vpop.permute.xlu1 %1085 }
0x108f   :  { %v2992_v8 = vadd.f32 %v1086_v7, %v1078_v5 }
0x1091   :  { %2337 = vtanh.f32 %v2992_v8 }
0x1097   :  { %v2336_v9 = vpop.eup %2335 }
0x1098   :  { %1171 = vrot.lane.b32.xlu0 %v2336_v9, %s2549_s18 }
0x109b   :  { %v2338_v10 = vpop.eup %2337 }
0x109c   :  { %1091 = vrot.lane.b32.xlu1 %v2338_v10, %s2549_s18 }
0x110a   :  { %v1172_v12 = vpop.permute.xlu0 %1171 }
0x110b   :  { %v1174_v14 = vmul.f32 %v2332_v53, %v1172_v12 }
0x110d   :  { %v1262_v15 = vpack.c.bf16 %v1174_v14, %v1174_v14  ;;  %1176 = vrot.lane.b32.xlu1 %v1174_v14, %s2559_s0 }
0x110e   :  { %v1092_v19 = vpop.permute.xlu1 %1091 }
0x110f   :  { %v1264_v18 = vshrl.u32 %v1262_v15, 16  ;;  %v1094_v13 = vmul.f32 %v2334_v56, %v1092_v19 }
0x1111   :  { %v1266_v17 = vrot.slane %v1264_v18, 2  ;;  %v1183_v22 = vrot.slane %v1094_v13, %v2747_v11  ;;  %v2379_v18 = vld [vmem:[%s3145_s11] sm:$0xff]  }
0x1113   :  { %v3001_v23 = vsel %vm1614_vm7, %v2960_v27, %v1183_v22  ;;  %1184 = vrot.lane.b32.xlu0 %v1183_v22, %s2549_s18  ;;  %1267 = vrot.lane.b32.xlu1 %v1266_v17, %s2559_s0 }
0x117f   :  { %v1177_v25 = vpop.permute.xlu1 %1176 }
0x1185   :  { %v1185_v16 = vpop.permute.xlu0 %1184  ;;  %v1268_v26 = vpop.permute.xlu1 %1267 }
0x1186   :  { %v1187_v20 = vsel %vm260_vm2, %v1177_v25, %v1185_v16  ;;  %2181 = vmatmul.mubr.msk.bf16.vlgmr.msra.gmra.mrb[24].mxu1 %vm260_vm2, %v1268_v26  ;;  %v2381_v16 = vld [vmem:[%s3145_s11 + $0x10] sm:$0xff]   ;;  %v2382_v26 = vld [vmem:[%s3145_s11 + $0x18] sm:$0xff]  }
0x1187   :  { %v1188_v28 = vpack.c.bf16 %v1187_v20, %v1187_v20  ;;  %2185 = vmatpush3.bf16.msra.mxu1 %v2761_v39  ;;  %2192 = vmatprep.mubr.msk.bf16.mxu1 %vm2557_vm0, %v2556_v0  ;;  %v2378_v39 = vld [vmem:[#allocation10 + $0x8] sm:$0xff]  }
0x1188   :  { %2186 = vmatprep.subr.bf16.mxu1 %v2556_v0 }
0x1189   :  { %v1190_v27 = vshrl.u32 %v1188_v28, 16 }
0x118b   :  { %v1192_v24 = vrot.slane %v1190_v27, 2  ;;  %2187 = vmatpush3.bf16.msra.mxu1 %v2767_v40 }
0x118c   :  { %2188 = vmatprep.subr.bf16.mxu1 %v2556_v0 }
0x118d   :  { %2173 = vmatmul.mubr.msk.bf16.vlgmr.msra.gmra.mrb[28].mxu0 %vm360_vm3, %v1192_v24 }
0x118e   :  { %2197 = vmatpush3.bf16.msra.mxu0 %v2377_v32  ;;  %2200 = vmatprep.mubr.msk.bf16.mxu0 %vm2557_vm0, %v2556_v0 }
0x118f   :  { %2198 = vmatprep.subr.bf16.mxu0 %v2556_v0  ;;  %2189 = vmatpush3.bf16.msra.mxu1 %v2774_v41 }
0x1190   :  { %2190 = vmatprep.subr.bf16.mxu1 %v2556_v0 }
0x1192   :  { %2199 = vmatpush3.bf16.msra.mxu0 %v2378_v39 }
0x1193   :  { %2191 = vmatpush3.bf16.msra.mxu1 %v2783_v43  ;;  %2204 = vmatprep.subr.bf16.mxu0 %v2556_v0 }
0x1194   :  { %2216 = vmatprep.subr.bf16.mxu1 %v2556_v0 }
0x1259   :  { %v1306_v40 = vpop.f32.mrb[24].mxu1 }
0x125a   :  { %v1313_v33 = vrot.slane %v1306_v40, 2  ;;  %v2182_v34 = vpop.f32.mrb[25].mxu1 }
0x125b   :  { %v1309_v35 = vpop.f32.mrb[26].mxu1 }
0x125c   :  { %v1315_v31 = vadd.f32 %v1313_v33, %v2750_v21  ;;  %v2183_v36 = vpop.f32.mrb[27].mxu1 }
0x125e   :  { %v1943_v4 = vmul.f32 -1.442695, %v1315_v31 }
0x1260   :  { %2339 = vpow2.f32 %v1943_v4  ;;  %v1230_v41 = vpop.f32.mrb[28].mxu0 }
0x1261   :  { %v1236_v37 = vadd.f32 %v1230_v41, %v2811_v51  ;;  %v2174_v30 = vpop.f32.mrb[29].mxu0 }
0x1262   :  { %v1233_v29 = vpop.f32.mrb[30].mxu0 }
0x1263   :  { %v1940_v38 = vmul.f32 -1.442695, %v1236_v37  ;;  %v2175_v43 = vpop.f32.mrb[31].mxu0 }
0x1265   :  { %2341 = vpow2.f32 %v1940_v38 }
0x126a   :  { %v2340_v42 = vpop.eup %2339 }
0x126b   :  { %v1319_v44 = vadd.f32 1.0, %v2340_v42 }
0x126d   :  { %2343 = vrcp.f32 %v1319_v44 }
0x126f   :  { %v2342_v45 = vpop.eup %2341 }
0x1270   :  { %v1240_v6 = vadd.f32 1.0, %v2342_v45 }
0x1272   :  { %2345 = vrcp.f32 %v1240_v6 }
0x1277   :  { %v2344_v46 = vpop.eup %2343 }
0x1278   :  { %v1322_v47 = vmul.f32 2.0, %v2344_v46  ;;  %v1327_v58 = vmul.f32 %v2344_v46, %v1325_v57 }
0x127a   :  { %v1944_v48 = vadd.f32 -1.0, %v1322_v47 }
0x127c   :  { %v2346_v49 = vpop.eup %2345  ;;  %1329 = vrot.lane.b32.xlu1 %v1944_v48, %s2549_s18 }
0x127d   :  { %v1243_v50 = vmul.f32 2.0, %v2346_v49  ;;  %v1245_v61 = vmul.f32 %v2346_v49, %v2992_v8 }
0x127f   :  { %v1941_v52 = vadd.f32 -1.0, %v1243_v50 }
0x1281   :  { %1247 = vrot.lane.b32.xlu0 %v1941_v52, %s2549_s18 }
0x12ee   :  { %v1330_v53 = vpop.permute.xlu1 %1329 }
0x12ef   :  { %v1332_v54 = vmul.f32 %v2344_v46, %v1330_v53 }
0x12f1   :  { %1334 = vrot.lane.b32.xlu1 %v1332_v54, %s2559_s0 }
0x12f3   :  { %v1248_v55 = vpop.permute.xlu0 %1247 }
0x12f4   :  { %v1250_v56 = vmul.f32 %v2346_v49, %v1248_v55 }
0x12f6   :  { %1252 = vrot.lane.b32.xlu0 %v1250_v56, %s2559_s0 }
0x1363   :  { %v1335_v59 = vpop.permute.xlu1 %1334 }
0x1364   :  { %v3029_v60 = vadd.f32 %v1335_v59, %v1327_v58 }
0x1366   :  { %2347 = vtanh.f32 %v3029_v60  ;;  %v1490_v48 = vrot.slane %v3029_v60, 7 }
0x1368   :  { %v1253_v62 = vpop.permute.xlu0 %1252 }
0x1369   :  { %v3033_v63 = vadd.f32 %v1253_v62, %v1245_v61 }
0x136b   :  { %2349 = vtanh.f32 %v3033_v63 }
0x1370   :  { %v2348_v1 = vpop.eup %2347 }
0x1371   :  { %1340 = vrot.lane.b32.xlu1 %v2348_v1, %s2549_s18 }
0x1375   :  { %v2350_v2 = vpop.eup %2349 }
0x1376   :  { %1258 = vrot.lane.b32.xlu0 %v2350_v2, %s2549_s18 }
0x13e3   :  { %v1341_v3 = vpop.permute.xlu1 %1340 }
0x13e4   :  { %v1343_v5 = vmul.f32 %v2344_v46, %v1341_v3 }
0x13e6   :  { %v1429_v7 = vpack.c.bf16 %v1343_v5, %v1343_v5  ;;  %1345 = vrot.lane.b32.xlu0 %v1343_v5, %s2559_s0 }
0x13e8   :  { %v1431_v9 = vrot.slane %v1429_v7, 3  ;;  %v1259_v10 = vpop.permute.xlu0 %1258 }
0x13e9   :  { %v1261_v12 = vmul.f32 %v2346_v49, %v1259_v10 }
0x13ea   :  { %1432 = vrot.lane.b32.xlu0 %v1431_v9, %s2559_s0 }
0x13eb   :  { %v1352_v8 = vrot.slane %v1261_v12, %v2747_v11  ;;  %v2383_v12 = vld [vmem:[%s3146_s12] sm:$0x1] }
0x13ed   :  { %1353 = vrot.lane.b32.xlu1 %v1352_v8, %s2549_s18  ;;  %v3043_v14 = vsel %vm1616_vm8, %v3001_v23, %v1352_v8  ;;  %v2380_v23 = vld [vmem:[%s3145_s11 + $0x8] sm:$0xff]  }
0x1458   :  { %v1346_v15 = vpop.permute.xlu0 %1345 }
0x145c   :  { %v1433_v19 = vpop.permute.xlu0 %1432 }
0x145d   :  { %2201 = vmatmul.mubr.msk.bf16.vlgmr.msra.gmra.mrb[32].mxu0 %vm260_vm2, %v1433_v19 }
0x145e   :  { %2205 = vmatpush3.bf16.msra.mxu0 %v2379_v18  ;;  %2212 = vmatprep.mubr.msk.bf16.mxu0 %vm2557_vm0, %v2556_v0 }
0x145f   :  { %v1354_v13 = vpop.permute.xlu1 %1353  ;;  %2206 = vmatprep.subr.bf16.mxu0 %v2556_v0 }
0x1460   :  { %v1356_v17 = vsel %vm260_vm2, %v1346_v15, %v1354_v13 }
0x1461   :  { %v1357_v22 = vpack.c.bf16 %v1356_v17, %v1356_v17 }
0x1462   :  { %2207 = vmatpush3.bf16.msra.mxu0 %v2380_v23 }
0x1463   :  { %v1359_v25 = vrot.slane %v1357_v22, 3  ;;  %2208 = vmatprep.subr.bf16.mxu0 %v2556_v0 }
0x1465   :  { %2193 = vmatmul.mubr.msk.bf16.vlgmr.msra.gmra.mrb[28].mxu1 %vm360_vm3, %v1359_v25 }
0x1466   :  { %2209 = vmatpush3.bf16.msra.mxu0 %v2381_v16  ;;  %2220 = vmatprep.mubr.msk.bf16.mxu1 %vm2557_vm0, %v2556_v0 }
0x1467   :  { %2210 = vmatprep.subr.bf16.mxu0 %v2556_v0 }
0x146a   :  { %2211 = vmatpush3.bf16.msra.mxu0 %v2382_v26 }
0x146b   :  { %2230 = vmatprep.subr.bf16.mxu0 %v2556_v0 }
0x1530   :  { %v1471_v20 = vpop.f32.mrb[32].mxu0 }
0x1531   :  { %v1478_v28 = vrot.slane %v1471_v20, 1  ;;  %v2202_v27 = vpop.f32.mrb[33].mxu0 }
0x1532   :  { %v1474_v24 = vpop.f32.mrb[34].mxu0 }
0x1533   :  { %v1480_v32 = vadd.f32 %v1478_v28, %v2750_v21  ;;  %v2203_v39 = vpop.f32.mrb[35].mxu0  ;;  %v2267_v24 = vld [vmem:[%s3137_s3] sm:$0xff]  }
0x1534   :  { %2217 = vmatpush3.bf16.msra.mxu1 %v2267_v24 }
0x1535   :  { %v1949_v40 = vmul.f32 -1.442695, %v1480_v32  ;;  %v2268_v32 = vld [vmem:[%s3137_s3 + $0x8] sm:$0xff]   ;;  %2218 = vmatprep.subr.bf16.mxu1 %v2556_v0 }
0x1537   :  { %2351 = vpow2.f32 %v1949_v40 }
0x1538   :  { %v1397_v33 = vpop.f32.mrb[28].mxu1  ;;  %2219 = vmatpush3.bf16.msra.mxu1 %v2268_v32 }
0x1539   :  { %v1403_v34 = vadd.f32 %v1397_v33, %v2811_v51  ;;  %v2194_v35 = vpop.f32.mrb[29].mxu1  ;;  %2224 = vmatprep.subr.bf16.mxu1 %v2556_v0 }
0x153a   :  { %v1400_v31 = vpop.f32.mrb[30].mxu1 }
0x153b   :  { %v1946_v36 = vmul.f32 -1.442695, %v1403_v34  ;;  %v2195_v4 = vpop.f32.mrb[31].mxu1 }
0x153d   :  { %2353 = vpow2.f32 %v1946_v36 }
0x1541   :  { %v2352_v41 = vpop.eup %2351 }
0x1542   :  { %v1484_v37 = vadd.f32 1.0, %v2352_v41 }
0x1544   :  { %2355 = vrcp.f32 %v1484_v37 }
0x1547   :  { %v2354_v30 = vpop.eup %2353 }
0x1548   :  { %v1407_v29 = vadd.f32 1.0, %v2354_v30 }
0x154a   :  { %2357 = vrcp.f32 %v1407_v29 }
0x154e   :  { %v2356_v38 = vpop.eup %2355 }
0x154f   :  { %v1487_v43 = vmul.f32 2.0, %v2356_v38  ;;  %v1492_v49 = vmul.f32 %v2356_v38, %v1490_v48  ;;  %v2269_v48 = vld [vmem:[%s3139_s5] sm:$0xff]  }
0x1551   :  { %v1950_v21 = vadd.f32 -1.0, %v1487_v43 }
0x1553   :  { %1494 = vrot.lane.b32.xlu0 %v1950_v21, %s2549_s18 }
0x1554   :  { %v2358_v42 = vpop.eup %2357 }
0x1555   :  { %v1410_v44 = vmul.f32 2.0, %v2358_v42  ;;  %v1412_v53 = vmul.f32 %v2358_v42, %v3033_v63 }
0x1557   :  { %v1947_v45 = vadd.f32 -1.0, %v1410_v44  ;;  %v1698_v44 = vld [vmem:[#allocation2] sm:$0xf] }
0x1559   :  { %1414 = vrot.lane.b32.xlu1 %v1947_v45, %s2549_s18  ;;  %v1703_v45 = vsel %vm1614_vm7, %v1698_v44, 0 }
0x15c5   :  { %v1495_v51 = vpop.permute.xlu0 %1494 }
0x15c6   :  { %v1497_v6 = vmul.f32 %v2356_v38, %v1495_v51  ;;  %v2271_v51 = vld [vmem:[#allocation5] sm:$0xff]  }
0x15c8   :  { %1499 = vrot.lane.b32.xlu0 %v1497_v6, %s2559_s0 }
0x15cb   :  { %v1415_v46 = vpop.permute.xlu1 %1414 }
0x15cc   :  { %v1417_v47 = vmul.f32 %v2358_v42, %v1415_v46 }
0x15ce   :  { %1419 = vrot.lane.b32.xlu1 %v1417_v47, %s2559_s0 }
0x163a   :  { %v1500_v50 = vpop.permute.xlu0 %1499 }
0x163b   :  { %v1502_v52 = vadd.f32 %v1500_v50, %v1492_v49  ;;  %v2270_v50 = vld [vmem:[%s3139_s5 + $0x8] sm:$0xff]   ;;  %s2560_s5 = smov [#allocation13]  }
0x163d   :  { %2359 = vtanh.f32 %v1502_v52  ;;  %v2272_v52 = vld [vmem:[#allocation5 + $0x8] sm:$0xff]  }
0x1640   :  { %v1420_v54 = vpop.permute.xlu1 %1419 }
0x1641   :  { %v1422_v55 = vadd.f32 %v1420_v54, %v1412_v53 }
0x1643   :  { %2361 = vtanh.f32 %v1422_v55 }
0x1647   :  { %v2360_v56 = vpop.eup %2359 }
0x1648   :  { %1505 = vrot.lane.b32.xlu0 %v2360_v56, %s2549_s18 }
0x164d   :  { %v2362_v57 = vpop.eup %2361 }
0x164e   :  { %1425 = vrot.lane.b32.xlu1 %v2362_v57, %s2549_s18 }
0x16ba   :  { %v1506_v58 = vpop.permute.xlu0 %1505 }
0x16bb   :  { %v1508_v59 = vmul.f32 %v2356_v38, %v1506_v58 }
0x16bd   :  { %1510 = vrot.lane.b32.xlu1 %v1508_v59, %s2559_s0 }
0x16c0   :  { %v1426_v60 = vpop.permute.xlu1 %1425 }
0x16c1   :  { %v1428_v61 = vmul.f32 %v2358_v42, %v1426_v60 }
0x16c3   :  { %v1517_v62 = vrot.slane %v1428_v61, %v2747_v11 }
0x16c5   :  { %v1619_v63 = vsel %vm1618_vm9, %v3043_v14, %v1517_v62  ;;  %1518 = vrot.lane.b32.xlu0 %v1517_v62, %s2549_s18 }
0x172f   :  { %v1511_v1 = vpop.permute.xlu1 %1510 }
0x1737   :  { %v1519_v2 = vpop.permute.xlu0 %1518 }
0x1738   :  { %v1521_v3 = vsel %vm260_vm2, %v1511_v1, %v1519_v2 }
0x1739   :  { %v1522_v5 = vpack.c.bf16 %v1521_v3, %v1521_v3 }
0x173b   :  { %v1524_v7 = vshrl.u32 %v1522_v5, 16 }
0x173d   :  { %v1526_v9 = vrot.slane %v1524_v7, 3 }
0x173f   :  { %2213 = vmatmul.mubr.msk.bf16.vlgmr.msra.gmra.mrb[36].mxu0 %vm360_vm3, %v1526_v9 }
0x1740   :  { %2234 = vmatprep.mubr.msk.bf16.mxu0 %vm2557_vm0, %v2556_v0  ;;  %2231 = vmatpush3.bf16.msra.mxu0 %v2271_v51 }
0x1741   :  { %2232 = vmatprep.subr.bf16.mxu0 %v2556_v0 }
0x1744   :  { %2233 = vmatpush3.bf16.msra.mxu0 %v2272_v52 }
0x1812   :  { %v1564_v10 = vpop.f32.mrb[36].mxu0 }
0x1813   :  { %v1570_v8 = vadd.f32 %v2383_v12, %v1564_v10  ;;  %v2214_v14 = vpop.f32.mrb[37].mxu0 }
0x1814   :  { %v1567_v15 = vpop.f32.mrb[38].mxu0 }
0x1815   :  { %v1952_v19 = vmul.f32 -1.442695, %v1570_v8  ;;  %v2215_v18 = vpop.f32.mrb[39].mxu0 }
0x1817   :  { %2363 = vpow2.f32 %v1952_v19 }
0x1821   :  { %v2364_v13 = vpop.eup %2363 }
0x1822   :  { %v1574_v17 = vadd.f32 1.0, %v2364_v13 }
0x1824   :  { %2365 = vrcp.f32 %v1574_v17 }
0x182e   :  { %v2366_v22 = vpop.eup %2365 }
0x182f   :  { %v1577_v23 = vmul.f32 2.0, %v2366_v22  ;;  %v1579_v20 = vmul.f32 %v2366_v22, %v1422_v55 }
0x1831   :  { %v1953_v25 = vadd.f32 -1.0, %v1577_v23 }
0x1833   :  { %1581 = vrot.lane.b32.xlu1 %v1953_v25, %s2549_s18 }
0x18a5   :  { %v1582_v16 = vpop.permute.xlu1 %1581 }
0x18a6   :  { %v1584_v26 = vmul.f32 %v2366_v22, %v1582_v16 }
0x18a8   :  { %1586 = vrot.lane.b32.xlu0 %v1584_v26, %s2559_s0 }
0x191a   :  { %v1587_v28 = vpop.permute.xlu0 %1586 }
0x191b   :  { %v1589_v27 = vadd.f32 %v1587_v28, %v1579_v20 }
0x191d   :  { %2367 = vtanh.f32 %v1589_v27 }
0x1927   :  { %v2368_v39 = vpop.eup %2367 }
0x1928   :  { %1592 = vrot.lane.b32.xlu1 %v2368_v39, %s2549_s18 }
0x199a   :  { %v1593_v40 = vpop.permute.xlu1 %1592 }
0x199b   :  { %v1595_v33 = vmul.f32 %v2366_v22, %v1593_v40 }
0x199d   :  { %v1606_v34 = vrot.slane %v1595_v33, %v2747_v11 }
0x199f   :  { %v1621_v35 = vsel %vm1620_vm10, %v1619_v63, %v1606_v34  ;;  %v1964_v63 = vld [vmem:[#allocation7] ss:$0 sm:$0xff] }
0x19a0   :  { %v1622_v31 = vpack.c.bf16 %v1621_v35, %v1621_v35 }
0x19a2   :  { %1628 = vrot.lane.b32.xlu0 %v1622_v31, %s2559_s0  ;;  %s1885_s0 = sshll.u32 %s2560_s5, 4  ;;  %s1886_s0 = int_to_ptr.vmem [resolvable:$true] %s1885_s0 }
0x19a3   :  { %s2516_s1 = scalar_lea.vmem %s1886_s0, 128  ;;  %p2521_p7 = scmp.lt.s32.totalorder %s1886_s0, %s1886_s0 }
0x19a4   :  { %p2517_p6 = scmp.ne.s32.totalorder %s1886_s0, %s2516_s1  ;;  %p2522_p8 = scmp.lt.s32.totalorder %s2516_s1, %s2516_s1 }
0x19a6   :  { %p2523_p9 = por %p2522_p8, %p2521_p7 }
0x19a8   :  { %p2524_p10 = pnand %p2523_p9, %p2517_p6 }
0x1a14   :  { %v1629_v36 = vpop.permute.xlu0 %1628 }
0x1a15   :  { %2221 = vmatmul.mubr.msk.bf16.vlgmr.msra.gmra.mrb[32].mxu1 %vm260_vm2, %v1629_v36 }
0x1a16   :  { %2226 = vmatprep.mubr.msk.bf16.mxu1 %vm2557_vm0, %v2556_v0  ;;  %2225 = vmatpush3.bf16.msra.mxu1 %v1703_v45 }
0x1a17   :  { %2238 = vmatprep.subr.bf16.mxu1 %v2556_v0 }
0x1ae8   :  { %v1679_v4 = vpop.f32.mrb[32].mxu1 }
0x1ae9   :  { %v2222_v41 = vpop.f32.mrb[33].mxu1  ;;  %v1686_v37 = vsel %vm1685_vm11, %v1679_v4, -inf }
0x1aea   :  { %1687 = vmax.xlane.f32.xlu1 %v1686_v37  ;;  %v1682_v30 = vpop.f32.mrb[34].mxu1 }
0x1aeb   :  { %v2223_v29 = vpop.f32.mrb[35].mxu1 }
0x1b77   :  { %v1688_v38 = vpop.xlane.xlu1 %1687 }
0x1b78   :  { %v1689_v11 = vsub.f32 %v1679_v4, %v1688_v38 }
0x1b7a   :  { %v1690_v43 = vmul.f32 1.442695, %v1689_v11 }
0x1b7c   :  { %2369 = vpow2.f32 %v1690_v43 }
0x1b86   :  { %v2370_v21 = vpop.eup %2369 }
0x1b87   :  { %v1692_v42 = vsel %vm1685_vm11, %v2370_v21, 0.0 }
0x1b88   :  { %1693 = vadd.xlane.f32.xlu0 %v1692_v42 }
0x1c15   :  { %v1694_v6 = vpop.xlane.xlu0 %1693 }
0x1c16   :  { %2371 = vrcp.f32 %v1694_v6 }
0x1c20   :  { %v2372_v46 = vpop.eup %2371 }
0x1c21   :  { %v1696_v47 = vmul.f32 %v2372_v46, %v2370_v21 }
0x1c23   :  { %v1697_v49 = vpack.c.bf16 %v1696_v47, %v1696_v47 }
0x1c25   :  { %2227 = vmatmul.mubr.msk.bf16.vlgmr.msra.gmra.mrb[36].mxu1 %vm1685_vm11, %v1697_v49 }
0x1c26   :  { %2239 = vmatpush3.bf16.msra.mxu1 %v2269_v48  ;;  %2242 = vmatprep.mubr.msk.bf16.mxu1 %vm2557_vm0, %v2556_v0 }
0x1c27   :  { %2240 = vmatprep.subr.bf16.mxu1 %v2556_v0 }
0x1c2a   :  { %2241 = vmatpush3.bf16.msra.mxu1 %v2270_v50 }
0x1c2d   :  { %2243 = vmatmul.mubr.msk.bf16.vlgmr.msra.gmra.mrb[40].mxu1 %vm260_vm2, %v1629_v36 }
0x1cf8   :  { %v1739_v53 = vpop.f32.mrb[36].mxu1 }
0x1cf9   :  { %v1749_v54 = vpack.c.bf16 %v1739_v53, %v1739_v53  ;;  %v2228_v55 = vpop.f32.mrb[37].mxu1 }
0x1cfa   :  { %v1742_v56 = vpop.f32.mrb[38].mxu1 }
0x1cfb   :  { %v2229_v57 = vpop.f32.mrb[39].mxu1  ;;  %2235 = vmatmul.mubr.msk.bf16.vlgmr.msra.gmra.mrb[40].mxu0 %vm260_vm2, %v1749_v54 }
0x1d00   :  { %v1855_v58 = vpop.f32.mrb[40].mxu1 }
0x1d01   :  { %v2244_v59 = vpop.f32.mrb[41].mxu1 }
0x1d02   :  { %v1858_v60 = vpop.f32.mrb[42].mxu1 }
0x1d03   :  { %v2245_v61 = vpop.f32.mrb[43].mxu1 }
0x1dce   :  { %v1803_v62 = vpop.f32.mrb[40].mxu0 }
0x1dcf   :  { %v1856_v1 = vadd.f32 %v1855_v58, %v1803_v62  ;;  %v2236_v0 = vpop.f32.mrb[41].mxu0 }
0x1dd0   :  { %v1806_v2 = vpop.f32.mrb[42].mxu0 }
0x1dd1   :  { %v2237_v3 = vpop.f32.mrb[43].mxu0  ;;  %v1868_v5 = vadd.f32 %v1964_v63, %v1856_v1 }
0x1dd3   :  { %1869 = vmax.xlane.f32.xlu0 %v1868_v5 }
0x1e60   :  { %v1870_v7 = vpop.xlane.xlu0 %1869 }
0x1e61   :  { %v1871_v9 = vsub.f32 %v1868_v5, %v1870_v7 }
0x1e63   :  { %v1872_v10 = vmul.f32 1.442695, %v1871_v9 }
0x1e65   :  { %2373 = vpow2.f32 %v1872_v10 }
0x1e6f   :  { %v2374_v12 = vpop.eup %2373 }
0x1e70   :  { %1874 = vadd.xlane.f32.xlu1 %v2374_v12 }
0x1efd   :  { %v1875_v8 = vpop.xlane.xlu1 %1874 }
0x1efe   :  { %2375 = vrcp.f32 %v1875_v8 }
0x1f08   :  { %v2376_v14 = vpop.eup %2375 }
0x1f09   :  { %v1877_v15 = vmul.f32 %v2376_v14, %v2374_v12 }
0x1f0b   :  { %1878 = vst [vmem:[#allocation13] sm:$0xff] %v1877_v15 }
0x1f0c   :  { %2527 = shalt.err (!%p2524_p10)
}
0x1f0d   :  { %s2528_s7 = scalar_lea.hbm %s3147_s13, 128 }
0x1f0e   :  { %p2529_p11 = scmp.ne.s32.totalorder %s3147_s13, %s2528_s7  ;;  %p2532_p12 = scmp.lt.u32.totalorder %s2528_s7, %s3147_s13 }
0x1f10   :  { %p2534_p13 = pnand %p2532_p12, %p2529_p11 }
0x1f12   :  { %2537 = shalt.err (!%p2534_p13)
}
0x1f13   :  { %1888 = dma.vmem_to_hbm [thread:$0]  %s1886_s0, 128, %s3147_s13, [#allocation4]  }
0x1f14   :  { %2546 = dma.done.wait [#allocation4], 128  }
0x1f15   :  { %2547 = vsyncadd [#allocation4], 4294967168 }
0x1f16   :  { %1892 = vsyncpa [#allocation3], 1 }
0x1f17   :  { %1893 = vsyncpa [#allocation6], 1 }
0x1f18   :  { %1894 = vsyncpa [#allocation9], 1 }
0x1f19   :  { %1895 = vsyncpa [#allocation12], 1 }
0x1f1a   :  { %1896 = vsyncpa [#allocation4], 1 }

</bundles_post_ra>
